<compile_context>
chip_gen: v5e
topology: v5e:2x2
jax: 0.10.0
libtpu: 0.0.40
codegen_flags: <defaults>
</compile_context>

<pallas_src>
import math
import numpy as np
import jax
import jax.numpy as jnp
from jax.experimental import pallas as pl
from jax.experimental.pallas import tpu as pltpu

# ---------------- configuration (small, consistent with the module) ----------------
N = 256                      # number of coordinate points
FEAT_PER_CHANNEL = (2, 2)    # feat_per_channel
F0, F1 = FEAT_PER_CHANNEL
COORD_HIDDEN_IN = 91         # coord_hidden_features  -> int(91/sqrt(2)) = 64
AFTER_HIDDEN_IN = 91         # after_hidden_features  -> 64
BEFORE_HIDDEN_IN = 91        # before_hidden_features -> 64
H = int(COORD_HIDDEN_IN / np.sqrt(2))          # = 64
assert H == int(AFTER_HIDDEN_IN / np.sqrt(2)) == int(BEFORE_HIDDEN_IN / np.sqrt(2))
R = 1
COORD_HIDDEN_LAYERS = 2      # number of shared coord_net layers used in forward_coord
AFTER_HIDDEN_LAYERS = 2      # coord_net size (>= COORD_HIDDEN_LAYERS)
BEFORE_HIDDEN_LAYERS = 2
OUT_FEATURES = 3
H2 = 2 * H                   # 128 -- full lane width; both channels packed side-by-side


# ---------------- Pallas kernel: full fused forward over a row tile ----------------
def wire_inr_kernel(c0_ref, c1_ref, win_ref, bin_ref,
                    wc_ref, bc_ref,
                    wb_ref, bb_ref,
                    wf_ref, bf_ref,
                    out_ref):
    # ---- coord layer 0 with the per-channel input linear folded in (K=4 -> VPU FMAs) ----
    # win_ref = Win @ Wc0 (block-structured, f32), bin_ref = bin @ Wc0 + bc0.
    c0 = c0_ref[...]                        # (TN, F0)
    c1 = c1_ref[...]                        # (TN, F1)
    w_in = win_ref[...]                     # (F0+F1, 2H); cross-channel blocks are exactly zero
    h = bin_ref[...]                        # (1, 2H); broadcasts on the first add
    for k in range(F0):                     # static unroll
        h = h + c0[:, k:k + 1] * w_in[k:k + 1, :]
    for k in range(F1):
        h = h + c1[:, k:k + 1] * w_in[F0 + k:F0 + k + 1, :]
    h = jnp.maximum(h, 0.0)                 # ReLU of coord layer 0 (folded layer)
    # h: (TN, 2H), lanes [0:H] = relu(coord layer 0 of channel 0), lanes [H:2H] = channel 1

    # ---- remaining shared coord_net layers: block-diagonal (2H,2H) bf16 MXU dots ----
    for i in range(COORD_HIDDEN_LAYERS - 1):      # static unroll; slice weights from the ref
        h = jnp.maximum(
            jnp.dot(h.astype(jnp.bfloat16), wc_ref[i],
                    preferred_element_type=jnp.float32) + bc_ref[i], 0.0)

    # ---- 'prod' fusion: lanes [0:H]=h0, [H:2H]=h1 -> product duplicated in both halves ----
    prod = h * pltpu.roll(h, shift=H, axis=1)     # XLU lane rotation; lanes [0:H] == temp

    # ---- before-net (block-diagonal bf16 weights keep the duplicated-halves layout) ----
    h = prod
    for i in range(BEFORE_HIDDEN_LAYERS):
        h = jnp.maximum(
            jnp.dot(h.astype(jnp.bfloat16), wb_ref[i],
                    preferred_element_type=jnp.float32) + bb_ref[i], 0.0)

    # ---- final cfloat Linear (.real path): Re(Wf) packed into cols [H:H+OUT] of a (2H,2H) weight.
    # Columns [0:H] of wf/bf are exactly zero -> y lanes [0:H] are exactly zero.
    y = jnp.dot(h.astype(jnp.bfloat16), wf_ref[...],
                preferred_element_type=jnp.float32) + bf_ref[...]

    # ---- single lane-dense 128-wide store: temp in lanes [0:H], real output in lanes [H:H+OUT] ----
    lane = jax.lax.broadcasted_iota(jnp.int32, y.shape, 1)
    out_ref[...] = jnp.where(lane < H, prod, y)


# ---------------- host-side packing of weights into the lane-dense layout ----------------
def pack_params(params):
    (win0, bin0, win1, bin1, wc, bc, wb, bb, wf_re, bf_re) = params
    f0, f1 = FEAT_PER_CHANNEL
    hi = jax.lax.Precision.HIGHEST   # exact f32 for the offline weight folding

    def blockdiag(w):                                                  # (H,H) -> (2H,2H)
        z = jnp.zeros_like(w)
        return jnp.block([[w, z], [z, w]])

    # fused input weight: rows [0:f0] -> lanes [0:H] (ch 0), rows [f0:] -> lanes [H:2H] (ch 1)
    win = jnp.zeros((f0 + f1, H2), jnp.float32)
    win = win.at[:f0, :H].set(win0)
    win = win.at[f0:, H:].set(win1)
    bin_ = jnp.concatenate([bin0, bin1], axis=-1)                      # (1, 2H)

    # Fold the input linear into coord layer 0 (exact: no activation between them).
    wc0_bd = blockdiag(wc[0])
    bc0_bd = jnp.concatenate([bc[0], bc[0]], axis=-1)                  # (1, 2H)
    win_fused = jnp.dot(win, wc0_bd, precision=hi)                     # (f0+f1, 2H), f32 (VPU path)
    bin_fused = jnp.dot(bin_, wc0_bd, precision=hi) + bc0_bd           # (1, 2H), f32

    # Remaining shared coord layers (block-diagonal).  Config has COORD_HIDDEN_LAYERS >= 2;
    # if it were 1, pass an (unused) dummy layer so the kernel signature stays fixed.
    if wc.shape[0] > 1:
        wc_rest = jnp.stack([blockdiag(wc[i]) for i in range(1, wc.shape[0])])   # (Lc-1, 2H, 2H)
        bc_rest = jnp.concatenate([bc[1:], bc[1:]], axis=-1)                     # (Lc-1, 1, 2H)
    else:
        wc_rest = jnp.zeros((1, H2, H2), jnp.float32)
        bc_rest = jnp.zeros((1, 1, H2), jnp.float32)

    wb_bd = jnp.stack([blockdiag(wb[i]) for i in range(wb.shape[0])])  # (Lb, 2H, 2H)
    bb_bd = jnp.concatenate([bb, bb], axis=-1)                         # (Lb, 1, 2H)

    # Final weight padded so the real output lands in lanes [H:H+OUT] of the full-width slab.
    wf_big = jnp.zeros((H2, H2), jnp.float32).at[:H, H:H + OUT_FEATURES].set(wf_re)
    bf_big = jnp.zeros((1, H2), jnp.float32).at[:, H:H + OUT_FEATURES].set(bf_re)

    # Lane-merge invariants relied on by the kernel's final `jnp.where(lane < H, prod, y)`:
    #  * wb_bd/bb_bd are block-diagonal/duplicated -> the duplicated-halves layout of `prod`
    #    survives the before-net, so lanes [0:H] of `prod` are exactly temp.
    #  * columns [0:H] (and [H+OUT:]) of wf_big/bf_big are EXACTLY zero -> y lanes [0:H] are
    #    exactly zero and can be overwritten by `prod` without touching the real output lanes.

    # bf16 for MXU operands (single-pass matmul, half the weight DMA); biases and the folded
    # input layer stay f32 (VPU / post-dot adds are f32 on every generation, incl. v5e).
    return (win_fused, bin_fused,
            wc_rest.astype(jnp.bfloat16), bc_rest,
            wb_bd.astype(jnp.bfloat16), bb_bd,
            wf_big.astype(jnp.bfloat16), bf_big)


def _choose_tile(n):
    # Always aim for >=2 "parallel" grid steps so dual-TensorCore chips (v7x) keep both cores
    # busy (extra step costs only ~0.35 us on single-TC v5e/v6e).  Cap at 512 rows/step so at
    # large N the output-slab writeback of step i-1 overlaps compute of step i (v5e HBM regime).
    tile = max(8, min(512, pl.cdiv(n, 2)))
    return ((tile + 7) // 8) * 8


def wire_inr_forward(coords, packed):
    c0, c1 = coords
    c0 = c0.astype(jnp.float32)
    c1 = c1.astype(jnp.float32)
    n = c0.shape[0]
    tn = _choose_tile(n)
    n_pad = pl.cdiv(n, tn) * tn
    if n_pad != n:                                   # padded rows are sliced off below
        c0 = jnp.pad(c0, ((0, n_pad - n), (0, 0)))
        c1 = jnp.pad(c1, ((0, n_pad - n), (0, 0)))

    (win, bin_, wc, bc, wb, bb, wf, bf) = packed
    grid = (n_pad // tn,)

    def call(single_buffer_weights):
        def wspec(arr):
            idx = lambda i, _nd=arr.ndim: (0,) * _nd
            if single_buffer_weights:
                # Constant index map -> no need for double buffering of the weight blocks.
                return pl.BlockSpec(arr.shape, idx, pipeline_mode=pl.Buffered(1))
            return pl.BlockSpec(arr.shape, idx)

        in_specs = [
            pl.BlockSpec((tn, c0.shape[1]), lambda i: (i, 0)),
            pl.BlockSpec((tn, c1.shape[1]), lambda i: (i, 0)),
            wspec(win), wspec(bin_),
            wspec(wc), wspec(bc),
            wspec(wb), wspec(bb),
            wspec(wf), wspec(bf),
        ]
        out_specs = pl.BlockSpec((tn, H2), lambda i: (i, 0))
        return pl.pallas_call(
            wire_inr_kernel,
            grid=grid,
            in_specs=in_specs,
            out_specs=out_specs,
            out_shape=jax.ShapeDtypeStruct((n_pad, H2), jnp.float32),
            compiler_params=pltpu.CompilerParams(dimension_semantics=("parallel",)),
        )(c0, c1, win, bin_, wc, bc, wb, bb, wf, bf)

    try:
        slab = call(True)        # single-buffered constant weights
    except Exception:            # pipeline_mode=pl.Buffered(1) unsupported on this build
        slab = call(False)       # fall back to default (double-buffered) weight blocks

    slab = slab[:n]                                   # drop any padded rows
    temp = slab[:, :H]                                # lanes [0:H]   -> temp
    out = slab[:, H:H + OUT_FEATURES]                 # lanes [H:H+3] -> final real output
    return out, temp


# ---------------- deterministic parameter construction (PyTorch-Linear-style init) ----------------
def _linear_params(key, fan_in, fan_out):
    kw, kb = jax.random.split(key)
    bound = 1.0 / math.sqrt(fan_in)
    w = jax.random.uniform(kw, (fan_in, fan_out), jnp.float32, -bound, bound)  # stored as [in, out]
    b = jax.random.uniform(kb, (1, fan_out), jnp.float32, -bound, bound)
    return w, b


def make_params(key):
    keys = jax.random.split(key, 16)
    win0, bin0 = _linear_params(keys[0], FEAT_PER_CHANNEL[0], H)
    win1, bin1 = _linear_params(keys[1], FEAT_PER_CHANNEL[1], H)

    wc_list, bc_list = [], []
    for i in range(COORD_HIDDEN_LAYERS):
        out_dim = H * R if i == AFTER_HIDDEN_LAYERS - 1 else H   # R=1 -> H
        w, b = _linear_params(keys[2 + i], H, out_dim)
        wc_list.append(w)
        bc_list.append(b)
    wc = jnp.stack(wc_list)                      # (Lc, H, H)
    bc = jnp.stack(bc_list)                      # (Lc, 1, H)

    wb_list, bb_list = [], []
    for i in range(BEFORE_HIDDEN_LAYERS):
        w, b = _linear_params(keys[6 + i], H, H)
        wb_list.append(w)
        bb_list.append(b)
    wb = jnp.stack(wb_list)                      # (Lb, H, H)
    bb = jnp.stack(bb_list)                      # (Lb, 1, H)

    # final_linear is cfloat in the module; forward returns .real, so only Re(Wf), Re(bf) matter.
    wf_re, bf_re = _linear_params(keys[10], H, OUT_FEATURES)
    _wf_im, _bf_im = _linear_params(keys[11], H, OUT_FEATURES)   # imaginary parts unused by .real

    return (win0, bin0, win1, bin1, wc, bc, wb, bb, wf_re, bf_re)


# ---------------- pure-JAX reference (mirrors the PyTorch forward) ----------------
def reference_forward(coords, params):
    c0, c1 = coords
    (win0, bin0, win1, bin1, wc, bc, wb, bb, wf_re, bf_re) = params
    h0 = c0 @ win0 + bin0
    h1 = c1 @ win1 + bin1
    for i in range(COORD_HIDDEN_LAYERS):
        h0 = jnp.maximum(h0 @ wc[i] + bc[i], 0.0)
        h1 = jnp.maximum(h1 @ wc[i] + bc[i], 0.0)
    h = h0 * h1
    temp = h
    for i in range(BEFORE_HIDDEN_LAYERS):
        h = jnp.maximum(h @ wb[i] + bb[i], 0.0)
    y = h @ wf_re + bf_re                        # real part of the cfloat linear on real h
    return y.reshape(-1, OUT_FEATURES), temp


if __name__ == "__main__":
    key = jax.random.PRNGKey(0)
    k0, k1, kp = jax.random.split(key, 3)
    coord0 = jax.random.uniform(k0, (N, FEAT_PER_CHANNEL[0]), jnp.float32, -1.0, 1.0)
    coord1 = jax.random.uniform(k1, (N, FEAT_PER_CHANNEL[1]), jnp.float32, -1.0, 1.0)
    params = make_params(kp)
    packed = pack_params(params)

    out, temp = wire_inr_forward((coord0, coord1), packed)
    out = jax.block_until_ready(out)
    temp = jax.block_until_ready(temp)

    out_ref, temp_ref = reference_forward((coord0, coord1), params)
    assert out.shape == (N, OUT_FEATURES) and temp.shape == (N, H)
    # The kernel feeds the MXU bf16 operands (f32 accumulation); tolerances are sized for
    # ~2^-9 per-operand rounding across the four fused layers vs the f32 reference.
    np.testing.assert_allclose(np.asarray(out), np.asarray(out_ref), rtol=2e-2, atol=5e-3)
    np.testing.assert_allclose(np.asarray(temp), np.asarray(temp_ref), rtol=2e-2, atol=5e-3)

    print("KERNEL_OK")
</pallas_src>

<mosaic_0001>
module attributes {stable_mosaic.version = 11 : i64} {
  func.func @wire_inr_kernel(%arg0: i32, %arg1: memref<128x2xf32, #tpu.memory_space<vmem>>, %arg2: memref<128x2xf32, #tpu.memory_space<vmem>>, %arg3: memref<4x128xf32, #tpu.memory_space<vmem>>, %arg4: memref<1x128xf32, #tpu.memory_space<vmem>>, %arg5: memref<1x128x128xbf16, #tpu.memory_space<vmem>>, %arg6: memref<1x1x128xf32, #tpu.memory_space<vmem>>, %arg7: memref<2x128x128xbf16, #tpu.memory_space<vmem>>, %arg8: memref<2x1x128xf32, #tpu.memory_space<vmem>>, %arg9: memref<128x128xbf16, #tpu.memory_space<vmem>>, %arg10: memref<1x128xf32, #tpu.memory_space<vmem>>, %arg11: memref<128x128xf32, #tpu.memory_space<vmem>>) attributes {dimension_semantics = [#tpu.dimension_semantics<parallel>], iteration_bounds = array<i64: 2>, scalar_prefetch = 0 : i64, scratch_operands = 0 : i64, tpu.core_type = #tpu.core_type<tc>, window_params = [{transform_indices = @transform_0, window_bounds = array<i64: 128, 2>}, {transform_indices = @transform_1, window_bounds = array<i64: 128, 2>}, {pipeline_mode = #tpu.pipeline_mode<synchronous>, transform_indices = @transform_2, window_bounds = array<i64: 4, 128>}, {pipeline_mode = #tpu.pipeline_mode<synchronous>, transform_indices = @transform_3, window_bounds = array<i64: 1, 128>}, {pipeline_mode = #tpu.pipeline_mode<synchronous>, transform_indices = @transform_4, window_bounds = array<i64: 1, 128, 128>}, {pipeline_mode = #tpu.pipeline_mode<synchronous>, transform_indices = @transform_5, window_bounds = array<i64: 1, 1, 128>}, {pipeline_mode = #tpu.pipeline_mode<synchronous>, transform_indices = @transform_6, window_bounds = array<i64: 2, 128, 128>}, {pipeline_mode = #tpu.pipeline_mode<synchronous>, transform_indices = @transform_7, window_bounds = array<i64: 2, 1, 128>}, {pipeline_mode = #tpu.pipeline_mode<synchronous>, transform_indices = @transform_8, window_bounds = array<i64: 128, 128>}, {pipeline_mode = #tpu.pipeline_mode<synchronous>, transform_indices = @transform_9, window_bounds = array<i64: 1, 128>}, {transform_indices = @transform_10, window_bounds = array<i64: 128, 128>}]} {
    %c0 = arith.constant 0 : index
    %c0_0 = arith.constant 0 : index
    %0 = vector.load %arg1[%c0, %c0_0] : memref<128x2xf32, #tpu.memory_space<vmem>>, vector<128x2xf32>
    %c0_1 = arith.constant 0 : index
    %c0_2 = arith.constant 0 : index
    %1 = vector.load %arg2[%c0_1, %c0_2] : memref<128x2xf32, #tpu.memory_space<vmem>>, vector<128x2xf32>
    %c0_3 = arith.constant 0 : index
    %c0_4 = arith.constant 0 : index
    %2 = vector.load %arg3[%c0_3, %c0_4] : memref<4x128xf32, #tpu.memory_space<vmem>>, vector<4x128xf32>
    %c0_5 = arith.constant 0 : index
    %c0_6 = arith.constant 0 : index
    %3 = vector.load %arg4[%c0_5, %c0_6] : memref<1x128xf32, #tpu.memory_space<vmem>>, vector<1x128xf32>
    %4 = vector.extract_strided_slice %0 {offsets = [0, 0], sizes = [128, 1], strides = [1, 1]} : vector<128x2xf32> to vector<128x1xf32>
    %5 = vector.extract_strided_slice %2 {offsets = [0, 0], sizes = [1, 128], strides = [1, 1]} : vector<4x128xf32> to vector<1x128xf32>
    %6 = vector.broadcast %4 : vector<128x1xf32> to vector<128x128xf32>
    %7 = vector.broadcast %5 : vector<1x128xf32> to vector<128x128xf32>
    %8 = arith.mulf %6, %7 : vector<128x128xf32>
    %9 = vector.broadcast %3 : vector<1x128xf32> to vector<128x128xf32>
    %10 = arith.addf %9, %8 : vector<128x128xf32>
    %11 = vector.extract_strided_slice %0 {offsets = [0, 1], sizes = [128, 1], strides = [1, 1]} : vector<128x2xf32> to vector<128x1xf32>
    %12 = vector.extract_strided_slice %2 {offsets = [1, 0], sizes = [1, 128], strides = [1, 1]} : vector<4x128xf32> to vector<1x128xf32>
    %13 = vector.broadcast %11 : vector<128x1xf32> to vector<128x128xf32>
    %14 = vector.broadcast %12 : vector<1x128xf32> to vector<128x128xf32>
    %15 = arith.mulf %13, %14 : vector<128x128xf32>
    %16 = arith.addf %10, %15 : vector<128x128xf32>
    %17 = vector.extract_strided_slice %1 {offsets = [0, 0], sizes = [128, 1], strides = [1, 1]} : vector<128x2xf32> to vector<128x1xf32>
    %18 = vector.extract_strided_slice %2 {offsets = [2, 0], sizes = [1, 128], strides = [1, 1]} : vector<4x128xf32> to vector<1x128xf32>
    %19 = vector.broadcast %17 : vector<128x1xf32> to vector<128x128xf32>
    %20 = vector.broadcast %18 : vector<1x128xf32> to vector<128x128xf32>
    %21 = arith.mulf %19, %20 : vector<128x128xf32>
    %22 = arith.addf %16, %21 : vector<128x128xf32>
    %23 = vector.extract_strided_slice %1 {offsets = [0, 1], sizes = [128, 1], strides = [1, 1]} : vector<128x2xf32> to vector<128x1xf32>
    %24 = vector.extract_strided_slice %2 {offsets = [3, 0], sizes = [1, 128], strides = [1, 1]} : vector<4x128xf32> to vector<1x128xf32>
    %25 = vector.broadcast %23 : vector<128x1xf32> to vector<128x128xf32>
    %26 = vector.broadcast %24 : vector<1x128xf32> to vector<128x128xf32>
    %27 = arith.mulf %25, %26 : vector<128x128xf32>
    %28 = arith.addf %22, %27 : vector<128x128xf32>
    %cst = arith.constant 0.000000e+00 : f32
    %29 = vector.broadcast %cst : f32 to vector<128x128xf32>
    %30 = arith.maximumf %28, %29 : vector<128x128xf32>
    %31 = arith.truncf %30 : vector<128x128xf32> to vector<128x128xbf16>
    %c0_7 = arith.constant 0 : index
    %c0_8 = arith.constant 0 : index
    %c0_9 = arith.constant 0 : index
    %32 = vector.load %arg5[%c0_7, %c0_8, %c0_9] : memref<1x128x128xbf16, #tpu.memory_space<vmem>>, vector<1x128x128xbf16>
    %33 = vector.shape_cast %32 : vector<1x128x128xbf16> to vector<128x128xbf16>
    %cst_10 = arith.constant dense<0.000000e+00> : vector<128x128xf32>
    %34 = tpu.matmul %31, %33, %cst_10 {dimension_numbers = #tpu.dot_dimension_numbers<[1], [0], [0], [1], [0, 0, 1, 1], [], []>} : vector<128x128xbf16>, vector<128x128xbf16>, vector<128x128xf32> -> vector<128x128xf32>
    %c0_11 = arith.constant 0 : index
    %c0_12 = arith.constant 0 : index
    %c0_13 = arith.constant 0 : index
    %35 = vector.load %arg6[%c0_11, %c0_12, %c0_13] : memref<1x1x128xf32, #tpu.memory_space<vmem>>, vector<1x1x128xf32>
    %36 = vector.shape_cast %35 : vector<1x1x128xf32> to vector<1x128xf32>
    %37 = vector.broadcast %36 : vector<1x128xf32> to vector<128x128xf32>
    %38 = arith.addf %34, %37 : vector<128x128xf32>
    %cst_14 = arith.constant 0.000000e+00 : f32
    %39 = vector.broadcast %cst_14 : f32 to vector<128x128xf32>
    %40 = arith.maximumf %38, %39 : vector<128x128xf32>
    %c64_i32 = arith.constant 64 : i32
    %41 = tpu.dynamic_rotate %40 by %c64_i32 dim 1 : vector<128x128xf32>, i32 -> vector<128x128xf32>
    %42 = arith.mulf %40, %41 : vector<128x128xf32>
    %43 = arith.truncf %42 : vector<128x128xf32> to vector<128x128xbf16>
    %c0_15 = arith.constant 0 : index
    %c0_16 = arith.constant 0 : index
    %c0_17 = arith.constant 0 : index
    %44 = vector.load %arg7[%c0_15, %c0_16, %c0_17] : memref<2x128x128xbf16, #tpu.memory_space<vmem>>, vector<1x128x128xbf16>
    %45 = vector.shape_cast %44 : vector<1x128x128xbf16> to vector<128x128xbf16>
    %cst_18 = arith.constant dense<0.000000e+00> : vector<128x128xf32>
    %46 = tpu.matmul %43, %45, %cst_18 {dimension_numbers = #tpu.dot_dimension_numbers<[1], [0], [0], [1], [0, 0, 1, 1], [], []>} : vector<128x128xbf16>, vector<128x128xbf16>, vector<128x128xf32> -> vector<128x128xf32>
    %c0_19 = arith.constant 0 : index
    %c0_20 = arith.constant 0 : index
    %c0_21 = arith.constant 0 : index
    %47 = vector.load %arg8[%c0_19, %c0_20, %c0_21] : memref<2x1x128xf32, #tpu.memory_space<vmem>>, vector<1x1x128xf32>
    %48 = vector.shape_cast %47 : vector<1x1x128xf32> to vector<1x128xf32>
    %49 = vector.broadcast %48 : vector<1x128xf32> to vector<128x128xf32>
    %50 = arith.addf %46, %49 : vector<128x128xf32>
    %cst_22 = arith.constant 0.000000e+00 : f32
    %51 = vector.broadcast %cst_22 : f32 to vector<128x128xf32>
    %52 = arith.maximumf %50, %51 : vector<128x128xf32>
    %53 = arith.truncf %52 : vector<128x128xf32> to vector<128x128xbf16>
    %c1 = arith.constant 1 : index
    %c0_23 = arith.constant 0 : index
    %c0_24 = arith.constant 0 : index
    %54 = vector.load %arg7[%c1, %c0_23, %c0_24] : memref<2x128x128xbf16, #tpu.memory_space<vmem>>, vector<1x128x128xbf16>
    %55 = vector.shape_cast %54 : vector<1x128x128xbf16> to vector<128x128xbf16>
    %cst_25 = arith.constant dense<0.000000e+00> : vector<128x128xf32>
    %56 = tpu.matmul %53, %55, %cst_25 {dimension_numbers = #tpu.dot_dimension_numbers<[1], [0], [0], [1], [0, 0, 1, 1], [], []>} : vector<128x128xbf16>, vector<128x128xbf16>, vector<128x128xf32> -> vector<128x128xf32>
    %c1_26 = arith.constant 1 : index
    %c0_27 = arith.constant 0 : index
    %c0_28 = arith.constant 0 : index
    %57 = vector.load %arg8[%c1_26, %c0_27, %c0_28] : memref<2x1x128xf32, #tpu.memory_space<vmem>>, vector<1x1x128xf32>
    %58 = vector.shape_cast %57 : vector<1x1x128xf32> to vector<1x128xf32>
    %59 = vector.broadcast %58 : vector<1x128xf32> to vector<128x128xf32>
    %60 = arith.addf %56, %59 : vector<128x128xf32>
    %cst_29 = arith.constant 0.000000e+00 : f32
    %61 = vector.broadcast %cst_29 : f32 to vector<128x128xf32>
    %62 = arith.maximumf %60, %61 : vector<128x128xf32>
    %63 = arith.truncf %62 : vector<128x128xf32> to vector<128x128xbf16>
    %c0_30 = arith.constant 0 : index
    %c0_31 = arith.constant 0 : index
    %64 = vector.load %arg9[%c0_30, %c0_31] : memref<128x128xbf16, #tpu.memory_space<vmem>>, vector<128x128xbf16>
    %cst_32 = arith.constant dense<0.000000e+00> : vector<128x128xf32>
    %65 = tpu.matmul %63, %64, %cst_32 {dimension_numbers = #tpu.dot_dimension_numbers<[1], [0], [0], [1], [0, 0, 1, 1], [], []>} : vector<128x128xbf16>, vector<128x128xbf16>, vector<128x128xf32> -> vector<128x128xf32>
    %c0_33 = arith.constant 0 : index
    %c0_34 = arith.constant 0 : index
    %66 = vector.load %arg10[%c0_33, %c0_34] : memref<1x128xf32, #tpu.memory_space<vmem>>, vector<1x128xf32>
    %67 = vector.broadcast %66 : vector<1x128xf32> to vector<128x128xf32>
    %68 = arith.addf %65, %67 : vector<128x128xf32>
    %69 = tpu.iota {dimensions = array<i32: 1>} : vector<128x128xi32>
    %c64_i32_35 = arith.constant 64 : i32
    %70 = vector.broadcast %c64_i32_35 : i32 to vector<128x128xi32>
    %71 = arith.cmpi slt, %69, %70 : vector<128x128xi32>
    %72 = arith.select %71, %42, %68 : vector<128x128xi1>, vector<128x128xf32>
    %c0_36 = arith.constant 0 : index
    %c0_37 = arith.constant 0 : index
    %73 = vector.load %arg11[%c0_36, %c0_37] : memref<128x128xf32, #tpu.memory_space<vmem>>, vector<128x128xf32>
    tpu.vector_store %arg11[%c0_36, %c0_37], %72 {strides = array<i32>} : memref<128x128xf32, #tpu.memory_space<vmem>>, vector<128x128xf32>,
    return
  }
  func.func @transform_0(%arg0: i32) -> (i32, i32) {
    %c0_i32 = arith.constant 0 : i32
    %c0_i32_0 = arith.constant 0 : i32
    return %arg0, %c0_i32 : i32, i32
  }
  func.func @transform_1(%arg0: i32) -> (i32, i32) {
    %c0_i32 = arith.constant 0 : i32
    %c0_i32_0 = arith.constant 0 : i32
    return %arg0, %c0_i32 : i32, i32
  }
  func.func @transform_2(%arg0: i32) -> (i32, i32) {
    %c0_i32 = arith.constant 0 : i32
    %c0_i32_0 = arith.constant 0 : i32
    %c0_i32_1 = arith.constant 0 : i32
    return %c0_i32, %c0_i32_0 : i32, i32
  }
  func.func @transform_3(%arg0: i32) -> (i32, i32) {
    %c0_i32 = arith.constant 0 : i32
    %c0_i32_0 = arith.constant 0 : i32
    %c0_i32_1 = arith.constant 0 : i32
    return %c0_i32, %c0_i32_0 : i32, i32
  }
  func.func @transform_4(%arg0: i32) -> (i32, i32, i32) {
    %c0_i32 = arith.constant 0 : i32
    %c0_i32_0 = arith.constant 0 : i32
    %c0_i32_1 = arith.constant 0 : i32
    %c0_i32_2 = arith.constant 0 : i32
    return %c0_i32, %c0_i32_0, %c0_i32_1 : i32, i32, i32
  }
  func.func @transform_5(%arg0: i32) -> (i32, i32, i32) {
    %c0_i32 = arith.constant 0 : i32
    %c0_i32_0 = arith.constant 0 : i32
    %c0_i32_1 = arith.constant 0 : i32
    %c0_i32_2 = arith.constant 0 : i32
    return %c0_i32, %c0_i32_0, %c0_i32_1 : i32, i32, i32
  }
  func.func @transform_6(%arg0: i32) -> (i32, i32, i32) {
    %c0_i32 = arith.constant 0 : i32
    %c0_i32_0 = arith.constant 0 : i32
    %c0_i32_1 = arith.constant 0 : i32
    %c0_i32_2 = arith.constant 0 : i32
    return %c0_i32, %c0_i32_0, %c0_i32_1 : i32, i32, i32
  }
  func.func @transform_7(%arg0: i32) -> (i32, i32, i32) {
    %c0_i32 = arith.constant 0 : i32
    %c0_i32_0 = arith.constant 0 : i32
    %c0_i32_1 = arith.constant 0 : i32
    %c0_i32_2 = arith.constant 0 : i32
    return %c0_i32, %c0_i32_0, %c0_i32_1 : i32, i32, i32
  }
  func.func @transform_8(%arg0: i32) -> (i32, i32) {
    %c0_i32 = arith.constant 0 : i32
    %c0_i32_0 = arith.constant 0 : i32
    %c0_i32_1 = arith.constant 0 : i32
    return %c0_i32, %c0_i32_0 : i32, i32
  }
  func.func @transform_9(%arg0: i32) -> (i32, i32) {
    %c0_i32 = arith.constant 0 : i32
    %c0_i32_0 = arith.constant 0 : i32
    %c0_i32_1 = arith.constant 0 : i32
    return %c0_i32, %c0_i32_0 : i32, i32
  }
  func.func @transform_10(%arg0: i32) -> (i32, i32) {
    %c0_i32 = arith.constant 0 : i32
    %c0_i32_0 = arith.constant 0 : i32
    return %arg0, %c0_i32 : i32, i32
  }
}

module attributes {stable_mosaic.version = 11 : i64} {
  func.func @wire_inr_kernel(%arg0: i32, %arg1: memref<128x2xf32, #tpu.memory_space<vmem>>, %arg2: memref<128x2xf32, #tpu.memory_space<vmem>>, %arg3: memref<4x128xf32, #tpu.memory_space<vmem>>, %arg4: memref<1x128xf32, #tpu.memory_space<vmem>>, %arg5: memref<1x128x128xbf16, #tpu.memory_space<vmem>>, %arg6: memref<1x1x128xf32, #tpu.memory_space<vmem>>, %arg7: memref<2x128x128xbf16, #tpu.memory_space<vmem>>, %arg8: memref<2x1x128xf32, #tpu.memory_space<vmem>>, %arg9: memref<128x128xbf16, #tpu.memory_space<vmem>>, %arg10: memref<1x128xf32, #tpu.memory_space<vmem>>, %arg11: memref<128x128xf32, #tpu.memory_space<vmem>>) attributes {dimension_semantics = [#tpu.dimension_semantics<parallel>], iteration_bounds = array<i64: 2>, scalar_prefetch = 0 : i64, scratch_operands = 0 : i64, tpu.core_type = #tpu.core_type<tc>, window_params = [{transform_indices = @transform_0, window_bounds = array<i64: 128, 2>}, {transform_indices = @transform_1, window_bounds = array<i64: 128, 2>}, {pipeline_mode = #tpu.pipeline_mode<synchronous>, transform_indices = @transform_2, window_bounds = array<i64: 4, 128>}, {pipeline_mode = #tpu.pipeline_mode<synchronous>, transform_indices = @transform_3, window_bounds = array<i64: 1, 128>}, {pipeline_mode = #tpu.pipeline_mode<synchronous>, transform_indices = @transform_4, window_bounds = array<i64: 1, 128, 128>}, {pipeline_mode = #tpu.pipeline_mode<synchronous>, transform_indices = @transform_5, window_bounds = array<i64: 1, 1, 128>}, {pipeline_mode = #tpu.pipeline_mode<synchronous>, transform_indices = @transform_6, window_bounds = array<i64: 2, 128, 128>}, {pipeline_mode = #tpu.pipeline_mode<synchronous>, transform_indices = @transform_7, window_bounds = array<i64: 2, 1, 128>}, {pipeline_mode = #tpu.pipeline_mode<synchronous>, transform_indices = @transform_8, window_bounds = array<i64: 128, 128>}, {pipeline_mode = #tpu.pipeline_mode<synchronous>, transform_indices = @transform_9, window_bounds = array<i64: 1, 128>}, {transform_indices = @transform_10, window_bounds = array<i64: 128, 128>}]} {
    %c0 = arith.constant 0 : index
    %c0_0 = arith.constant 0 : index
    %0 = vector.load %arg1[%c0, %c0_0] : memref<128x2xf32, #tpu.memory_space<vmem>>, vector<128x2xf32>
    %c0_1 = arith.constant 0 : index
    %c0_2 = arith.constant 0 : index
    %1 = vector.load %arg2[%c0_1, %c0_2] : memref<128x2xf32, #tpu.memory_space<vmem>>, vector<128x2xf32>
    %c0_3 = arith.constant 0 : index
    %c0_4 = arith.constant 0 : index
    %2 = vector.load %arg3[%c0_3, %c0_4] : memref<4x128xf32, #tpu.memory_space<vmem>>, vector<4x128xf32>
    %c0_5 = arith.constant 0 : index
    %c0_6 = arith.constant 0 : index
    %3 = vector.load %arg4[%c0_5, %c0_6] : memref<1x128xf32, #tpu.memory_space<vmem>>, vector<1x128xf32>
    %4 = vector.extract_strided_slice %0 {offsets = [0, 0], sizes = [128, 1], strides = [1, 1]} : vector<128x2xf32> to vector<128x1xf32>
    %5 = vector.extract_strided_slice %2 {offsets = [0, 0], sizes = [1, 128], strides = [1, 1]} : vector<4x128xf32> to vector<1x128xf32>
    %6 = vector.broadcast %4 : vector<128x1xf32> to vector<128x128xf32>
    %7 = vector.broadcast %5 : vector<1x128xf32> to vector<128x128xf32>
    %8 = arith.mulf %6, %7 : vector<128x128xf32>
    %9 = vector.broadcast %3 : vector<1x128xf32> to vector<128x128xf32>
    %10 = arith.addf %9, %8 : vector<128x128xf32>
    %11 = vector.extract_strided_slice %0 {offsets = [0, 1], sizes = [128, 1], strides = [1, 1]} : vector<128x2xf32> to vector<128x1xf32>
    %12 = vector.extract_strided_slice %2 {offsets = [1, 0], sizes = [1, 128], strides = [1, 1]} : vector<4x128xf32> to vector<1x128xf32>
    %13 = vector.broadcast %11 : vector<128x1xf32> to vector<128x128xf32>
    %14 = vector.broadcast %12 : vector<1x128xf32> to vector<128x128xf32>
    %15 = arith.mulf %13, %14 : vector<128x128xf32>
    %16 = arith.addf %10, %15 : vector<128x128xf32>
    %17 = vector.extract_strided_slice %1 {offsets = [0, 0], sizes = [128, 1], strides = [1, 1]} : vector<128x2xf32> to vector<128x1xf32>
    %18 = vector.extract_strided_slice %2 {offsets = [2, 0], sizes = [1, 128], strides = [1, 1]} : vector<4x128xf32> to vector<1x128xf32>
    %19 = vector.broadcast %17 : vector<128x1xf32> to vector<128x128xf32>
    %20 = vector.broadcast %18 : vector<1x128xf32> to vector<128x128xf32>
    %21 = arith.mulf %19, %20 : vector<128x128xf32>
    %22 = arith.addf %16, %21 : vector<128x128xf32>
    %23 = vector.extract_strided_slice %1 {offsets = [0, 1], sizes = [128, 1], strides = [1, 1]} : vector<128x2xf32> to vector<128x1xf32>
    %24 = vector.extract_strided_slice %2 {offsets = [3, 0], sizes = [1, 128], strides = [1, 1]} : vector<4x128xf32> to vector<1x128xf32>
    %25 = vector.broadcast %23 : vector<128x1xf32> to vector<128x128xf32>
    %26 = vector.broadcast %24 : vector<1x128xf32> to vector<128x128xf32>
    %27 = arith.mulf %25, %26 : vector<128x128xf32>
    %28 = arith.addf %22, %27 : vector<128x128xf32>
    %cst = arith.constant 0.000000e+00 : f32
    %29 = vector.broadcast %cst : f32 to vector<128x128xf32>
    %30 = arith.maximumf %28, %29 : vector<128x128xf32>
    %31 = arith.truncf %30 : vector<128x128xf32> to vector<128x128xbf16>
    %c0_7 = arith.constant 0 : index
    %c0_8 = arith.constant 0 : index
    %c0_9 = arith.constant 0 : index
    %32 = vector.load %arg5[%c0_7, %c0_8, %c0_9] : memref<1x128x128xbf16, #tpu.memory_space<vmem>>, vector<1x128x128xbf16>
    %33 = vector.shape_cast %32 : vector<1x128x128xbf16> to vector<128x128xbf16>
    %cst_10 = arith.constant dense<0.000000e+00> : vector<128x128xf32>
    %34 = tpu.matmul %31, %33, %cst_10 {dimension_numbers = #tpu.dot_dimension_numbers<[1], [0], [0], [1], [0, 0, 1, 1], [], []>} : vector<128x128xbf16>, vector<128x128xbf16>, vector<128x128xf32> -> vector<128x128xf32>
    %c0_11 = arith.constant 0 : index
    %c0_12 = arith.constant 0 : index
    %c0_13 = arith.constant 0 : index
    %35 = vector.load %arg6[%c0_11, %c0_12, %c0_13] : memref<1x1x128xf32, #tpu.memory_space<vmem>>, vector<1x1x128xf32>
    %36 = vector.shape_cast %35 : vector<1x1x128xf32> to vector<1x128xf32>
    %37 = vector.broadcast %36 : vector<1x128xf32> to vector<128x128xf32>
    %38 = arith.addf %34, %37 : vector<128x128xf32>
    %cst_14 = arith.constant 0.000000e+00 : f32
    %39 = vector.broadcast %cst_14 : f32 to vector<128x128xf32>
    %40 = arith.maximumf %38, %39 : vector<128x128xf32>
    %c64_i32 = arith.constant 64 : i32
    %41 = tpu.dynamic_rotate %40 by %c64_i32 dim 1 : vector<128x128xf32>, i32 -> vector<128x128xf32>
    %42 = arith.mulf %40, %41 : vector<128x128xf32>
    %43 = arith.truncf %42 : vector<128x128xf32> to vector<128x128xbf16>
    %c0_15 = arith.constant 0 : index
    %c0_16 = arith.constant 0 : index
    %c0_17 = arith.constant 0 : index
    %44 = vector.load %arg7[%c0_15, %c0_16, %c0_17] : memref<2x128x128xbf16, #tpu.memory_space<vmem>>, vector<1x128x128xbf16>
    %45 = vector.shape_cast %44 : vector<1x128x128xbf16> to vector<128x128xbf16>
    %cst_18 = arith.constant dense<0.000000e+00> : vector<128x128xf32>
    %46 = tpu.matmul %43, %45, %cst_18 {dimension_numbers = #tpu.dot_dimension_numbers<[1], [0], [0], [1], [0, 0, 1, 1], [], []>} : vector<128x128xbf16>, vector<128x128xbf16>, vector<128x128xf32> -> vector<128x128xf32>
    %c0_19 = arith.constant 0 : index
    %c0_20 = arith.constant 0 : index
    %c0_21 = arith.constant 0 : index
    %47 = vector.load %arg8[%c0_19, %c0_20, %c0_21] : memref<2x1x128xf32, #tpu.memory_space<vmem>>, vector<1x1x128xf32>
    %48 = vector.shape_cast %47 : vector<1x1x128xf32> to vector<1x128xf32>
    %49 = vector.broadcast %48 : vector<1x128xf32> to vector<128x128xf32>
    %50 = arith.addf %46, %49 : vector<128x128xf32>
    %cst_22 = arith.constant 0.000000e+00 : f32
    %51 = vector.broadcast %cst_22 : f32 to vector<128x128xf32>
    %52 = arith.maximumf %50, %51 : vector<128x128xf32>
    %53 = arith.truncf %52 : vector<128x128xf32> to vector<128x128xbf16>
    %c1 = arith.constant 1 : index
    %c0_23 = arith.constant 0 : index
    %c0_24 = arith.constant 0 : index
    %54 = vector.load %arg7[%c1, %c0_23, %c0_24] : memref<2x128x128xbf16, #tpu.memory_space<vmem>>, vector<1x128x128xbf16>
    %55 = vector.shape_cast %54 : vector<1x128x128xbf16> to vector<128x128xbf16>
    %cst_25 = arith.constant dense<0.000000e+00> : vector<128x128xf32>
    %56 = tpu.matmul %53, %55, %cst_25 {dimension_numbers = #tpu.dot_dimension_numbers<[1], [0], [0], [1], [0, 0, 1, 1], [], []>} : vector<128x128xbf16>, vector<128x128xbf16>, vector<128x128xf32> -> vector<128x128xf32>
    %c1_26 = arith.constant 1 : index
    %c0_27 = arith.constant 0 : index
    %c0_28 = arith.constant 0 : index
    %57 = vector.load %arg8[%c1_26, %c0_27, %c0_28] : memref<2x1x128xf32, #tpu.memory_space<vmem>>, vector<1x1x128xf32>
    %58 = vector.shape_cast %57 : vector<1x1x128xf32> to vector<1x128xf32>
    %59 = vector.broadcast %58 : vector<1x128xf32> to vector<128x128xf32>
    %60 = arith.addf %56, %59 : vector<128x128xf32>
    %cst_29 = arith.constant 0.000000e+00 : f32
    %61 = vector.broadcast %cst_29 : f32 to vector<128x128xf32>
    %62 = arith.maximumf %60, %61 : vector<128x128xf32>
    %63 = arith.truncf %62 : vector<128x128xf32> to vector<128x128xbf16>
    %c0_30 = arith.constant 0 : index
    %c0_31 = arith.constant 0 : index
    %64 = vector.load %arg9[%c0_30, %c0_31] : memref<128x128xbf16, #tpu.memory_space<vmem>>, vector<128x128xbf16>
    %cst_32 = arith.constant dense<0.000000e+00> : vector<128x128xf32>
    %65 = tpu.matmul %63, %64, %cst_32 {dimension_numbers = #tpu.dot_dimension_numbers<[1], [0], [0], [1], [0, 0, 1, 1], [], []>} : vector<128x128xbf16>, vector<128x128xbf16>, vector<128x128xf32> -> vector<128x128xf32>
    %c0_33 = arith.constant 0 : index
    %c0_34 = arith.constant 0 : index
    %66 = vector.load %arg10[%c0_33, %c0_34] : memref<1x128xf32, #tpu.memory_space<vmem>>, vector<1x128xf32>
    %67 = vector.broadcast %66 : vector<1x128xf32> to vector<128x128xf32>
    %68 = arith.addf %65, %67 : vector<128x128xf32>
    %69 = tpu.iota {dimensions = array<i32: 1>} : vector<128x128xi32>
    %c64_i32_35 = arith.constant 64 : i32
    %70 = vector.broadcast %c64_i32_35 : i32 to vector<128x128xi32>
    %71 = arith.cmpi slt, %69, %70 : vector<128x128xi32>
    %72 = arith.select %71, %42, %68 : vector<128x128xi1>, vector<128x128xf32>
    %c0_36 = arith.constant 0 : index
    %c0_37 = arith.constant 0 : index
    %73 = vector.load %arg11[%c0_36, %c0_37] : memref<128x128xf32, #tpu.memory_space<vmem>>, vector<128x128xf32>
    tpu.vector_store %arg11[%c0_36, %c0_37], %72 {strides = array<i32>} : memref<128x128xf32, #tpu.memory_space<vmem>>, vector<128x128xf32>,
    return
  }
  func.func @transform_0(%arg0: i32) -> (i32, i32) {
    %c0_i32 = arith.constant 0 : i32
    %c0_i32_0 = arith.constant 0 : i32
    return %arg0, %c0_i32 : i32, i32
  }
  func.func @transform_1(%arg0: i32) -> (i32, i32) {
    %c0_i32 = arith.constant 0 : i32
    %c0_i32_0 = arith.constant 0 : i32
    return %arg0, %c0_i32 : i32, i32
  }
  func.func @transform_2(%arg0: i32) -> (i32, i32) {
    %c0_i32 = arith.constant 0 : i32
    %c0_i32_0 = arith.constant 0 : i32
    %c0_i32_1 = arith.constant 0 : i32
    return %c0_i32, %c0_i32_0 : i32, i32
  }
  func.func @transform_3(%arg0: i32) -> (i32, i32) {
    %c0_i32 = arith.constant 0 : i32
    %c0_i32_0 = arith.constant 0 : i32
    %c0_i32_1 = arith.constant 0 : i32
    return %c0_i32, %c0_i32_0 : i32, i32
  }
  func.func @transform_4(%arg0: i32) -> (i32, i32, i32) {
    %c0_i32 = arith.constant 0 : i32
    %c0_i32_0 = arith.constant 0 : i32
    %c0_i32_1 = arith.constant 0 : i32
    %c0_i32_2 = arith.constant 0 : i32
    return %c0_i32, %c0_i32_0, %c0_i32_1 : i32, i32, i32
  }
  func.func @transform_5(%arg0: i32) -> (i32, i32, i32) {
    %c0_i32 = arith.constant 0 : i32
    %c0_i32_0 = arith.constant 0 : i32
    %c0_i32_1 = arith.constant 0 : i32
    %c0_i32_2 = arith.constant 0 : i32
    return %c0_i32, %c0_i32_0, %c0_i32_1 : i32, i32, i32
  }
  func.func @transform_6(%arg0: i32) -> (i32, i32, i32) {
    %c0_i32 = arith.constant 0 : i32
    %c0_i32_0 = arith.constant 0 : i32
    %c0_i32_1 = arith.constant 0 : i32
    %c0_i32_2 = arith.constant 0 : i32
    return %c0_i32, %c0_i32_0, %c0_i32_1 : i32, i32, i32
  }
  func.func @transform_7(%arg0: i32) -> (i32, i32, i32) {
    %c0_i32 = arith.constant 0 : i32
    %c0_i32_0 = arith.constant 0 : i32
    %c0_i32_1 = arith.constant 0 : i32
    %c0_i32_2 = arith.constant 0 : i32
    return %c0_i32, %c0_i32_0, %c0_i32_1 : i32, i32, i32
  }
  func.func @transform_8(%arg0: i32) -> (i32, i32) {
    %c0_i32 = arith.constant 0 : i32
    %c0_i32_0 = arith.constant 0 : i32
    %c0_i32_1 = arith.constant 0 : i32
    return %c0_i32, %c0_i32_0 : i32, i32
  }
  func.func @transform_9(%arg0: i32) -> (i32, i32) {
    %c0_i32 = arith.constant 0 : i32
    %c0_i32_0 = arith.constant 0 : i32
    %c0_i32_1 = arith.constant 0 : i32
    return %c0_i32, %c0_i32_0 : i32, i32
  }
  func.func @transform_10(%arg0: i32) -> (i32, i32) {
    %c0_i32 = arith.constant 0 : i32
    %c0_i32_0 = arith.constant 0 : i32
    return %arg0, %c0_i32 : i32, i32
  }
}

</mosaic_0001>

<bundles_post_ra>
// kernel: tpu_custom_call.1
= control target key start
LH: loop header
LB: loop body
LE: loop exit
PB: predicated region body
PF: predicated region fallthrough
CT: control target
= control target key end

     0   :  { %15 = vsyncpa [#allocation3], 0  ;;  %s2674_s0 = inlined_call_operand.vmem [shape: f32[256,2], index: 0, kind: input, shape index: {}]   ;;  %s2675_s1 = inlined_call_operand.vmem [shape: f32[256,2], index: 1, kind: input, shape index: {}]   ;;  %s2676_s2 = inlined_call_operand.vmem [shape: f32[4,128], index: 2, kind: input, shape index: {}]   ;;  %s2677_s3 = inlined_call_operand.vmem [shape: f32[1,128], index: 3, kind: input, shape index: {}]   ;;  %s2678_s4 = inlined_call_operand.vmem [shape: bf16[1,128,128], index: 4, kind: input, shape index: {}]   ;;  %s2679_s5 = inlined_call_operand.vmem [shape: f32[1,1,128], index: 5, kind: input, shape index: {}]   ;;  %s2680_s6 = inlined_call_operand.vmem [shape: bf16[2,128,128], index: 6, kind: input, shape index: {}]   ;;  %s2681_s7 = inlined_call_operand.vmem [shape: f32[2,1,128], index: 7, kind: input, shape index: {}]   ;;  %s2682_s8 = inlined_call_operand.vmem [shape: bf16[128,128], index: 8, kind: input, shape index: {}]   ;;  %s2683_s9 = inlined_call_operand.vmem [shape: f32[1,128], index: 9, kind: input, shape index: {}]   ;;  %s2684_s10 = inlined_call_operand.hbm [shape: f32[256,128], index: 10, kind: output, shape index: {}]  }
   0x1   :  { %17 = vsyncpa [#allocation3 + $0x1], 0  ;;  %s1978_s13 = smov 0   ;;  %s1980_s14 = smov 0  }
   0x2   :  { %s1982_s15 = smov 0   ;;  %s1984_s16 = smov 0  }
   0x3 LB: > { %s1999_s17 = sadd.s32 4294967295, %s1916_s16   ;;  %s1579_s18 = sadd.s32 4294967294, %s1916_s16   ;;  %s1916_s16 = sphi %s1984_s16, %s2690_s16   ;;  %s1912_s15 = sphi %s1982_s15, %s2689_s15   ;;  %s1908_s14 = sphi %s1980_s14, %s2688_s14   ;;  %s1904_s13 = sphi %s1978_s13, %s2687_s13  }
   0x4   : > { %s2003_s19 = sadd.s32 1, %s1916_s16   ;;  %s250_s20 = sadd.s32 1, %s1912_s15 }
   0x5   : > { %s247_s21 = ssub.s32 %s1916_s16, %s2003_s19  ;;  %p260_p0 = scmp.ne.s32.totalorder %s1912_s15, %s1908_s14 }
   0x6   : > { %p248_p1 = scmp.eq.s32.totalorder %s247_s21, 0  ;;  %p261_p2 = scmp.eq.s32.totalorder %s1999_s17, 1 }
   0x7   : > { %p266_p3 = scmp.ne.s32.totalorder %s1908_s14, %s1904_s13  ;;  %p267_p4 = scmp.eq.s32.totalorder %s1579_s18, 1 }
   0x8   : > { %s2014_s22 = scalar_select %p248_p1, %s1912_s15, %s250_s20  }
   0x9   : > { %p2016_p5 = por %p261_p2, %p260_p0  ;;  %p2020_p6 = por %p267_p4, %p266_p3 }
   0xa   : > { %p1582_p7 = scmp.ge.s32.totalorder %s1916_s16, 1  ;;  %p327_p8 = scmp.lt.s32.totalorder %s1916_s16, 3 }
   0xc   : > { %p328_p9 = pnand %p1582_p7, %p327_p8 }
   0xd   : > { %s1584_s25 = sshll.u32 (!%p328_p9), %s1999_s17, 4  ;;  %s1920_s21 = smov (!%p328_p9), 64  }
   0xe   : > { %331 = sbr.rel (%p328_p9) target bundleno = 1028 (0x404), region = 60  ;;  %p371_p10 = scmp.lt.s32.totalorder (!%p328_p9), %s1584_s25, 31 }
   0xf   : > { %s1770_s28 = sshll.u32 (!%p328_p9), %s1999_s17, 7  ;;  %s1874_s30 = scalar_lea.hbm (!%p328_p9), %s2684_s10, 256 }
  0x13   : > { %v1918_v0 = vmov 1   ;;  %v1919_v1 = vmov 0   ;;  %s2692_s25 = smov (!%p371_p10, %s1584_s25), 31  ;;  %v1745_v22 = vld [vmem:[%s2678_s4 + $0x38] sm:$0xff]  ;;  %v1744_v25 = vld [vmem:[%s2678_s4 + $0x30] sm:$0xff]  ;;  %v1743_v26 = vld [vmem:[%s2678_s4 + $0x28] sm:$0xff] }
  0x14   : > { %1816 = vset.pattern.permute.xlu1 %v1918_v0  ;;  %1817 = vset.pattern.permute.xlu2 %v1919_v1  ;;  %s1585_s26 = sshll.u32 %s2692_s25, 3  ;;  %v1742_v28 = vld [vmem:[%s2678_s4 + $0x20] sm:$0xff]  ;;  %v1741_v29 = vld [vmem:[%s2678_s4 + $0x18] sm:$0xff]  ;;  %v1740_v31 = vld [vmem:[%s2678_s4 + $0x10] sm:$0xff] }
  0x15   : > { %1815 = vset.pattern.permute.xlu0 %v1919_v1  ;;  %s2033_s29 = scalar_lea.vmem %s2675_s1, %s1585_s26  ;;  %s2038_s12 = scalar_lea.vmem %s2674_s0, %s1585_s26  ;;  %932 = vmatpush.bf16.msra.mxu0 %v1745_v22  ;;  %v1739_v35 = vld [vmem:[%s2678_s4 + $0x8] sm:$0xff]  ;;  %v1738_v38 = vld [vmem:[%s2678_s4] sm:$0xff] }
  0x16   : > { %v399_v2 = vld [vmem:[%s2033_s29] sm:$0xff]  ;;  %v400_v4 = vld [vmem:[%s2033_s29 + $0x8] sm:$0xff]  ;;  %v385_v6 = vld [vmem:[%s2038_s12 + $0x10] sm:$0xff] }
  0x17   : > { %v383_v3 = vld [vmem:[%s2038_s12] sm:$0xff]  ;;  %632 = vperm.xlu2 %1817, %v399_v2   ;;  %v384_v5 = vld [vmem:[%s2038_s12 + $0x8] sm:$0xff]  ;;  %v386_v9 = vld [vmem:[%s2038_s12 + $0x18] sm:$0xff] }
  0x18   : > { %534 = vperm.xlu1 %1816, %v383_v3   ;;  %419 = vperm.xlu0 %1815, %v383_v3   ;;  %v388_v7 = vld [vmem:[%s2038_s12 + $0x28] sm:$0xff]  ;;  %v401_v10 = vld [vmem:[%s2033_s29 + $0x10] sm:$0xff]  ;;  %v402_v11 = vld [vmem:[%s2033_s29 + $0x18] sm:$0xff] }
  0x19   : > { %v2047_v8 = vld [vmem:[%s2038_s12 + $0x48] sm:$0xff]  ;;  %v387_v12 = vld [vmem:[%s2038_s12 + $0x20] sm:$0xff]  ;;  %v390_v15 = vld [vmem:[%s2038_s12 + $0x38] sm:$0xff]  ;;  %933 = vmatpush.bf16.msra.mxu0 %v1744_v25 }
  0x1a   : > { %v403_v13 = vld [vmem:[%s2033_s29 + $0x20] sm:$0xff]  ;;  %v404_v14 = vld [vmem:[%s2033_s29 + $0x28] sm:$0xff]  ;;  %v389_v16 = vld [vmem:[%s2038_s12 + $0x30] sm:$0xff] }
  0x1b   : > { %v405_v17 = vld [vmem:[%s2033_s29 + $0x30] sm:$0xff]  ;;  %v407_v18 = vld [vmem:[%s2033_s29 + $0x40] sm:$0xff]  ;;  %v406_v19 = vld [vmem:[%s2033_s29 + $0x38] sm:$0xff] }
  0x1c   : > { %v394_v20 = vld [vmem:[%s2038_s12 + $0x58] sm:$0xff]  ;;  %v391_v21 = vld [vmem:[%s2038_s12 + $0x40] sm:$0xff]  ;;  %v409_v24 = vld [vmem:[%s2033_s29 + $0x50] sm:$0xff] }
  0x1d   : > { %934 = vmatpush.bf16.msra.mxu0 %v1743_v26  ;;  %v408_v30 = vld [vmem:[%s2033_s29 + $0x48] sm:$0xff]  ;;  %v393_v37 = vld [vmem:[%s2038_s12 + $0x50] sm:$0xff]  ;;  %v2123_v42 = vld [vmem:[%s2033_s29 + $0x60] sm:$0xff] }
  0x1e   : > { %v2111_v36 = vld [vmem:[%s2038_s12 + $0x68] sm:$0xff]  ;;  %v415_v43 = vld [vmem:[%s2676_s2] sm:$0xf]  ;;  %v2136_v48 = vld [vmem:[%s2038_s12 + $0x78] sm:$0xff] }
  0x1f   : > { %637 = vperm.xlu2 %1817, %v400_v4   ;;  %v2133_v46 = vperm.slane %v415_v43, 0  ;;  %v2143_v50 = vld [vmem:[%s2677_s3] ss:$0 sm:$0xff]  ;;  %v410_v52 = vld [vmem:[%s2033_s29 + $0x58] sm:$0xff]  ;;  %v2148_v53 = vperm.slane %v415_v43, 1  ;;  %v2153_v57 = vperm.slane %v415_v43, 2 }
  0x20   : > { %538 = vperm.xlu1 %1816, %v384_v5   ;;  %424 = vperm.xlu0 %1815, %v384_v5   ;;  %v2157_v60 = vperm.slane %v415_v43, 3  ;;  %v2160_v61 = vld [vmem:[%s2033_s29 + $0x70] sm:$0xff] }
  0x21   : > { %935 = vmatpush.bf16.msra.mxu0 %v1742_v28 }
  0x25   : > { %936 = vmatpush.bf16.msra.mxu0 %v1741_v29 }
  0x27   : > { %429 = vperm.xlu2 %1817, %v385_v6  }
  0x28   : > { %748 = vperm.xlu1 %1816, %v400_v4   ;;  %444 = vperm.xlu0 %1815, %v388_v7  }
  0x29   : > { %937 = vmatpush.bf16.msra.mxu0 %v1740_v31 }
  0x2d   : > { %938 = vmatpush.bf16.msra.mxu0 %v1739_v35  ;;  %v412_v35 = vld [vmem:[%s2033_s29 + $0x68] sm:$0xff] }
  0x2f   : > { %1819 = vset.pattern.permute.xlu2 %v1918_v0 }
  0x30   : > { %1818 = vset.pattern.permute.xlu1 %v1919_v1  ;;  %464 = vperm.xlu0 %1815, %v2047_v8  }
  0x31   : > { %542 = vperm.xlu2 %1819, %v385_v6   ;;  %434 = vperm.xlu1 %1818, %v386_v9  }
  0x32   : > { %939 = vmatpush.bf16.msra.mxu0 %v1738_v38 }
  0x38   : > { %1830 = vset.pattern.permute.xlu0 %v1918_v0 }
  0x39   : > { %1820 = vset.pattern.permute.xlu2 %v1919_v1  ;;  %642 = vperm.xlu1 %1818, %v401_v10  }
  0x3a   : > { %744 = vperm.xlu0 %1830, %v399_v2   ;;  %647 = vperm.xlu2 %1820, %v402_v11  }
  0x41   : > { %1821 = vset.pattern.permute.xlu1 %v1918_v0 }
  0x42   : > { %546 = vperm.xlu0 %1830, %v386_v9   ;;  %439 = vperm.xlu2 %1820, %v387_v12  }
  0x43   : > { %756 = vperm.xlu1 %1821, %v402_v11  }
  0x4a   : > { %752 = vperm.xlu0 %1830, %v401_v10   ;;  %1822 = vset.pattern.permute.xlu2 %v1918_v0 }
  0x4b   : > { %550 = vperm.xlu1 %1821, %v387_v12   ;;  %554 = vperm.xlu2 %1822, %v388_v7   ;;  %v395_v7 = vld [vmem:[%s2038_s12 + $0x60] sm:$0xff] }
  0x52   : > { %760 = vperm.xlu0 %1830, %v403_v13  }
  0x53   : > { %1823 = vset.pattern.permute.xlu1 %v1919_v1  ;;  %1824 = vset.pattern.permute.xlu2 %v1919_v1 }
  0x54   : > { %652 = vperm.xlu1 %1823, %v403_v13   ;;  %657 = vperm.xlu2 %1824, %v404_v14  }
  0x5a   : > { %562 = vperm.xlu0 %1830, %v390_v15  }
  0x5c   : > { %1825 = vset.pattern.permute.xlu1 %v1918_v0  ;;  %449 = vperm.xlu2 %1824, %v389_v16  }
  0x5d   : > { %764 = vperm.xlu1 %1825, %v404_v14  }
  0x62   : > { %768 = vperm.xlu0 %1830, %v405_v17  }
  0x64   : > { %1827 = vset.pattern.permute.xlu2 %v1918_v0 }
  0x65   : > { %1826 = vset.pattern.permute.xlu1 %v1919_v1  ;;  %558 = vperm.xlu2 %1827, %v389_v16  }
  0x66   : > { %454 = vperm.xlu1 %1826, %v390_v15  }
  0x6a   : > { %776 = vperm.xlu0 %1830, %v407_v18  }
  0x6d   : > { %1828 = vset.pattern.permute.xlu2 %v1919_v1 }
  0x6e   : > { %662 = vperm.xlu1 %1826, %v405_v17   ;;  %667 = vperm.xlu2 %1828, %v406_v19  }
  0x71   : > { %v2078_v23 = vpop.permute.xlu2 %632 }
  0x72   : > { %578 = vperm.xlu0 %1830, %v394_v20   ;;  %v711_v3 = vmul.f32 %v2153_v57, %v2078_v23 }
  0x76   : > { %1829 = vset.pattern.permute.xlu1 %v1918_v0  ;;  %459 = vperm.xlu2 %1828, %v391_v21  }
  0x77   : > { %772 = vperm.xlu1 %1829, %v406_v19  }
  0x79   : > { %v2089_v27 = vpop.permute.xlu2 %637 }
  0x7a   : > { %784 = vperm.xlu0 %1830, %v409_v24   ;;  %v712_v4 = vmul.f32 %v2153_v57, %v2089_v27 }
  0x7e   : > { %1831 = vset.pattern.permute.xlu2 %v1918_v0 }
  0x7f   : > { %566 = vperm.xlu1 %1829, %v391_v21   ;;  %570 = vperm.xlu2 %1831, %v2047_v8  }
  0x81   : > { %v2105_v32 = vpop.permute.xlu2 %429 }
  0x82   : > { %1839 = vset.pattern.permute.xlu0 %v1919_v1  ;;  %v500_v19 = vmul.f32 %v2133_v46, %v2105_v32 }
  0x83   : > { %484 = vperm.xlu0 %1839, %v2111_v36  }
  0x84   : > { %v519_v25 = vadd.f32 %v2143_v50, %v500_v19 }
  0x87   : > { %1832 = vset.pattern.permute.xlu1 %v1919_v1  ;;  %1833 = vset.pattern.permute.xlu2 %v1919_v1 }
  0x88   : > { %672 = vperm.xlu1 %1832, %v407_v18   ;;  %677 = vperm.xlu2 %1833, %v408_v30  }
  0x8a   : > { %v535_v33 = vpop.permute.xlu1 %534  ;;  %v420_v34 = vpop.permute.xlu0 %419 }
  0x8b   : > { %v2119_v40 = vpop.permute.xlu2 %542  ;;  %1843 = vset.pattern.permute.xlu0 %v1918_v0  ;;  %v498_v51 = vmul.f32 %v2133_v46, %v420_v34  ;;  %v598_v62 = vmul.f32 %v2148_v53, %v535_v33 }
  0x8c   : > { %792 = vperm.xlu0 %1843, %v2123_v42   ;;  %v600_v26 = vmul.f32 %v2148_v53, %v2119_v40 }
  0x8d   : > { %v517_v58 = vadd.f32 %v2143_v50, %v498_v51 }
  0x8e   : > { %v616_v31 = vadd.f32 %v600_v26, %v519_v25 }
  0x8f   : > { %v614_v5 = vadd.f32 %v598_v62, %v517_v58 }
  0x90   : > { %1834 = vset.pattern.permute.xlu1 %v1918_v0  ;;  %469 = vperm.xlu2 %1833, %v393_v37  }
  0x91   : > { %780 = vperm.xlu1 %1834, %v408_v30   ;;  %v727_v12 = vadd.f32 %v711_v3, %v614_v5 }
  0x92   : > { %v539_v39 = vpop.permute.xlu1 %538  ;;  %v425_v41 = vpop.permute.xlu0 %424 }
  0x93   : > { %v499_v49 = vmul.f32 %v2133_v46, %v425_v41  ;;  %v599_v59 = vmul.f32 %v2148_v53, %v539_v39 }
  0x94   : > { %v648_v47 = vpop.permute.xlu2 %647  ;;  %594 = vperm.xlu0 %1843, %v2136_v48  }
  0x95   : > { %v518_v54 = vadd.f32 %v2143_v50, %v499_v49  ;;  %v714_v27 = vmul.f32 %v2153_v57, %v648_v47  ;;  %v397_v47 = vld [vmem:[%s2038_s12 + $0x70] sm:$0xff] }
  0x97   : > { %v615_v63 = vadd.f32 %v599_v59, %v518_v54 }
  0x98   : > { %1836 = vset.pattern.permute.xlu2 %v1918_v0 }
  0x99   : > { %1835 = vset.pattern.permute.xlu1 %v1919_v1  ;;  %574 = vperm.xlu2 %1836, %v393_v37   ;;  %v728_v8 = vadd.f32 %v712_v4, %v615_v63 }
  0x9a   : > { %474 = vperm.xlu1 %1835, %v394_v20   ;;  %v749_v44 = vpop.permute.xlu1 %748  ;;  %v2131_v45 = vpop.permute.xlu0 %444 }
  0x9b   : > { %v809_v6 = vmul.f32 %v2157_v60, %v749_v44  ;;  %v503_v49 = vmul.f32 %v2133_v46, %v2131_v45 }
  0x9c   : > { %v440_v2 = vpop.permute.xlu2 %439  ;;  %800 = vperm.xlu0 %1843, %v2160_v61  }
  0x9d   : > { %v825_v11 = vadd.f32 %v809_v6, %v728_v8 }
  0x9f   : > { %v841_v15 = vmax.f32 %v825_v11, 0.0 }
  0xa1   : > { %1837 = vset.pattern.permute.xlu2 %v1919_v1 }
  0xa2   : > { %682 = vperm.xlu1 %1835, %v409_v24   ;;  %v2151_v55 = vpop.permute.xlu0 %464  ;;  %687 = vperm.xlu2 %1837, %v410_v52  }
  0xa3   : > { %v435_v56 = vpop.permute.xlu1 %434 }
  0xa4   : > { %v501_v16 = vmul.f32 %v2133_v46, %v435_v56  ;;  %v522_v56 = vadd.f32 %v2143_v50, %v503_v49 }
  0xa5   : > { %v555_v17 = vpop.permute.xlu2 %554 }
  0xa6   : > { %v520_v22 = vadd.f32 %v2143_v50, %v501_v16  ;;  %v603_v59 = vmul.f32 %v2148_v53, %v555_v17 }
  0xaa   : > { %1838 = vset.pattern.permute.xlu1 %v1918_v0  ;;  %479 = vperm.xlu2 %1837, %v395_v7  }
  0xab   : > { %788 = vperm.xlu1 %1838, %v410_v52   ;;  %v643_v9 = vpop.permute.xlu1 %642 }
  0xac   : > { %v745_v10 = vpop.permute.xlu0 %744  ;;  %v713_v29 = vmul.f32 %v2153_v57, %v643_v9 }
  0xad   : > { %v808_v13 = vmul.f32 %v2157_v60, %v745_v10 }
  0xae   : > { %v658_v32 = vpop.permute.xlu2 %657 }
  0xaf   : > { %v824_v14 = vadd.f32 %v808_v13, %v727_v12  ;;  %v716_v3 = vmul.f32 %v2153_v57, %v658_v32 }
  0xb1   : > { %v840_v18 = vmax.f32 %v824_v14, 0.0 }
  0xb2   : > { %1840 = vset.pattern.permute.xlu2 %v1918_v0 }
  0xb3   : > { %582 = vperm.xlu1 %1838, %v395_v7   ;;  %v856_v20 = vpack.c.bf16 %v841_v15, %v840_v18  ;;  %586 = vperm.xlu2 %1840, %v2111_v36   ;;  %v729_v36 = vadd.f32 %v713_v29, %v616_v31  ;;  %v414_v15 = vld [vmem:[%s2033_s29 + $0x78] sm:$0xff]  ;;  %s367_s29 = sand.u32 1, %s1908_s14  }
  0xb4   : > { %v547_v21 = vpop.permute.xlu0 %546  ;;  %s1583_s26 = sshll.u32 %s367_s29, 7  ;;  %s1490_s17 = scalar_lea.sflag [#allocation3], %s367_s29 }
  0xb5   : > { %v601_v23 = vmul.f32 %v2148_v53, %v547_v21  ;;  %v757_v24 = vpop.permute.xlu1 %756  ;;  %940 = vmatmul.bf16.vlgmr.msra.gmra.mxu0 %v856_v20  ;;  %s2560_s27 = scalar_lea.vmem [#allocation2], %s1583_s26 }
  0xb6   : > { %v811_v33 = vmul.f32 %v2157_v60, %v757_v24  ;;  %v450_v51 = vpop.permute.xlu2 %449  ;;  %s1502_s18 = sshll.u32 %s2560_s27, 4  ;;  %s1503_s18 = int_to_ptr.vmem [resolvable:$true] %s1502_s18 }
  0xb7   : > { %v617_v28 = vadd.f32 %v601_v23, %v520_v22  ;;  %v504_v17 = vmul.f32 %v2133_v46, %v450_v51 }
  0xb9   : > { %v730_v30 = vadd.f32 %v714_v27, %v617_v28  ;;  %v523_v20 = vadd.f32 %v2143_v50, %v504_v17 }
  0xbb   : > { %1841 = vset.pattern.permute.xlu1 %v1919_v1  ;;  %1842 = vset.pattern.permute.xlu2 %v1919_v1  ;;  %v827_v37 = vadd.f32 %v811_v33, %v730_v30 }
  0xbc   : > { %692 = vperm.xlu1 %1841, %v2123_v42   ;;  %v753_v34 = vpop.permute.xlu0 %752  ;;  %697 = vperm.xlu2 %1842, %v412_v35   ;;  %v502_v42 = vmul.f32 %v2133_v46, %v440_v2  ;;  %v619_v2 = vadd.f32 %v603_v59, %v522_v56 }
  0xbd   : > { %v810_v38 = vmul.f32 %v2157_v60, %v753_v34  ;;  %v551_v39 = vpop.permute.xlu1 %550  ;;  %v843_v41 = vmax.f32 %v827_v37, 0.0 }
  0xbe   : > { %v602_v52 = vmul.f32 %v2148_v53, %v551_v39  ;;  %v521_v58 = vadd.f32 %v2143_v50, %v502_v42  ;;  %v732_v8 = vadd.f32 %v716_v3, %v619_v2 }
  0xbf   : > { %v826_v40 = vadd.f32 %v810_v38, %v729_v36  ;;  %v559_v6 = vpop.permute.xlu2 %558 }
  0xc0   : > { %v618_v45 = vadd.f32 %v602_v52, %v521_v58 }
  0xc1   : > { %v842_v43 = vmax.f32 %v826_v40, 0.0 }
  0xc3   : > { %v857_v44 = vpack.c.bf16 %v843_v41, %v842_v43 }
  0xc4   : > { %1844 = vset.pattern.permute.xlu1 %v1918_v0  ;;  %489 = vperm.xlu2 %1842, %v397_v47   ;;  %v761_v63 = vpop.permute.xlu0 %760 }
  0xc5   : > { %796 = vperm.xlu1 %1844, %v412_v35   ;;  %945 = vmatmul.bf16.gmra.mxu0 %v857_v44  ;;  %v812_v4 = vmul.f32 %v2157_v60, %v761_v63 }
  0xc6   : > { %v653_v54 = vpop.permute.xlu1 %652 }
  0xc7   : > { %v715_v62 = vmul.f32 %v2153_v57, %v653_v54 }
  0xc9   : > { %v731_v5 = vadd.f32 %v715_v62, %v618_v45 }
  0xcb   : > { %v828_v10 = vadd.f32 %v812_v4, %v731_v5 }
  0xcc   : > { %1846 = vset.pattern.permute.xlu2 %v1918_v0  ;;  %v563_v18 = vpop.permute.xlu0 %562 }
  0xcd   : > { %1845 = vset.pattern.permute.xlu1 %v1919_v1  ;;  %590 = vperm.xlu2 %1846, %v397_v47   ;;  %v844_v13 = vmax.f32 %v828_v10, 0.0  ;;  %v605_v22 = vmul.f32 %v2148_v53, %v563_v18  ;;  %v507_v47 = vmul.f32 %v2133_v46, %v2151_v55 }
  0xce   : > { %494 = vperm.xlu1 %1845, %v2136_v48   ;;  %v668_v48 = vpop.permute.xlu2 %667 }
  0xcf   : > { %v765_v7 = vpop.permute.xlu1 %764  ;;  %v718_v26 = vmul.f32 %v2153_v57, %v668_v48  ;;  %v526_v58 = vadd.f32 %v2143_v50, %v507_v47 }
  0xd0   : > { %v813_v9 = vmul.f32 %v2157_v60, %v765_v7 }
  0xd2   : > { %v829_v11 = vadd.f32 %v813_v9, %v732_v8 }
  0xd4   : > { %v845_v12 = vmax.f32 %v829_v11, 0.0  ;;  %v769_v29 = vpop.permute.xlu0 %768 }
  0xd5   : > { %1847 = vset.pattern.permute.xlu2 %v1919_v1 }
  0xd6   : > { %702 = vperm.xlu1 %1845, %v2160_v61   ;;  %v858_v14 = vpack.c.bf16 %v845_v12, %v844_v13  ;;  %707 = vperm.xlu2 %1847, %v414_v15   ;;  %v604_v61 = vmul.f32 %v2148_v53, %v559_v6  ;;  %v460_v24 = vpop.permute.xlu2 %459 }
  0xd7   : > { %v506_v41 = vmul.f32 %v2133_v46, %v460_v24 }
  0xd8   : > { %v455_v16 = vpop.permute.xlu1 %454  ;;  %950 = vmatmul.bf16.gmra.mxu0 %v858_v14  ;;  %v620_v25 = vadd.f32 %v604_v61, %v523_v20 }
  0xd9   : > { %v505_v19 = vmul.f32 %v2133_v46, %v455_v16  ;;  %v525_v49 = vadd.f32 %v2143_v50, %v506_v41 }
  0xdb   : > { %v524_v1 = vadd.f32 %v2143_v50, %v505_v19 }
  0xdc   : > { %v777_v54 = vpop.permute.xlu0 %776 }
  0xdd   : > { %v621_v27 = vadd.f32 %v605_v22, %v524_v1  ;;  %v816_v63 = vmul.f32 %v2157_v60, %v777_v54 }
  0xde   : > { %1848 = vset.pattern.permute.xlu1 %v1918_v0  ;;  %v814_v0 = vmul.f32 %v2157_v60, %v769_v29  ;;  %v571_v35 = vpop.permute.xlu2 %570 }
  0xdf   : > { %804 = vperm.xlu1 %1848, %v414_v15   ;;  %v734_v31 = vadd.f32 %v718_v26, %v621_v27  ;;  %v607_v51 = vmul.f32 %v2148_v53, %v571_v35 }
  0xe0   : > { %v663_v21 = vpop.permute.xlu1 %662 }
  0xe1   : > { %v717_v23 = vmul.f32 %v2153_v57, %v663_v21  ;;  %v623_v45 = vadd.f32 %v607_v51, %v526_v58 }
  0xe3   : > { %v733_v28 = vadd.f32 %v717_v23, %v620_v25 }
  0xe4   : > { %v579_v11 = vpop.permute.xlu0 %578 }
  0xe5   : > { %v830_v33 = vadd.f32 %v814_v0, %v733_v28  ;;  %v609_v19 = vmul.f32 %v2148_v53, %v579_v11 }
  0xe6   : > { %v678_v40 = vpop.permute.xlu2 %677 }
  0xe7   : > { %v846_v37 = vmax.f32 %v830_v33, 0.0  ;;  %v720_v59 = vmul.f32 %v2153_v57, %v678_v40  ;;  %v2247_v40 = vld [vmem:[%s2679_s5] ss:$0 sm:$0xff] }
  0xe9   : > { %v773_v30 = vpop.permute.xlu1 %772  ;;  %v736_v3 = vadd.f32 %v720_v59, %v623_v45 }
  0xea   : > { %v815_v32 = vmul.f32 %v2157_v60, %v773_v30 }
  0xec   : > { %v831_v34 = vadd.f32 %v815_v32, %v734_v31  ;;  %v785_v61 = vpop.permute.xlu0 %784 }
  0xed   : > { %v818_v24 = vmul.f32 %v2157_v60, %v785_v61 }
  0xee   : > { %v847_v36 = vmax.f32 %v831_v34, 0.0  ;;  %v470_v56 = vpop.permute.xlu2 %469 }
  0xef   : > { %v508_v12 = vmul.f32 %v2133_v46, %v470_v56 }
  0xf0   : > { %v859_v38 = vpack.c.bf16 %v847_v36, %v846_v37 }
  0xf1   : > { %v567_v39 = vpop.permute.xlu1 %566  ;;  %v527_v15 = vadd.f32 %v2143_v50, %v508_v12 }
  0xf2   : > { %955 = vmatmul.bf16.gmra.mxu0 %v859_v38  ;;  %v606_v43 = vmul.f32 %v2148_v53, %v567_v39 }
  0xf4   : > { %v622_v52 = vadd.f32 %v606_v43, %v525_v49 }
  0xf5   : > { %v485_v34 = vpop.permute.xlu0 %484 }
  0xf6   : > { %v575_v8 = vpop.permute.xlu2 %574  ;;  %v511_v36 = vmul.f32 %v2133_v46, %v485_v34 }
  0xf7   : > { %v608_v16 = vmul.f32 %v2148_v53, %v575_v8 }
  0xf9   : > { %v624_v20 = vadd.f32 %v608_v16, %v527_v15 }
  0xfa   : > { %v673_v44 = vpop.permute.xlu1 %672 }
  0xfb   : > { %v719_v42 = vmul.f32 %v2153_v57, %v673_v44  ;;  %v530_v44 = vadd.f32 %v2143_v50, %v511_v36 }
  0xfd   : > { %v735_v62 = vadd.f32 %v719_v42, %v622_v52 }
  0xfe   : > { %v688_v13 = vpop.permute.xlu2 %687  ;;  %v793_v51 = vpop.permute.xlu0 %792 }
  0xff   : > { %v832_v4 = vadd.f32 %v816_v63, %v735_v62  ;;  %v722_v22 = vmul.f32 %v2153_v57, %v688_v13  ;;  %v820_v58 = vmul.f32 %v2157_v60, %v793_v51 }
 0x101   : > { %v848_v7 = vmax.f32 %v832_v4, 0.0 }
 0x103   : > { %v781_v2 = vpop.permute.xlu1 %780 }
 0x104   : > { %v817_v55 = vmul.f32 %v2157_v60, %v781_v2 }
 0x106   : > { %v833_v5 = vadd.f32 %v817_v55, %v736_v3  ;;  %v480_v23 = vpop.permute.xlu2 %479  ;;  %v595_v13 = vpop.permute.xlu0 %594 }
 0x107   : > { %v510_v35 = vmul.f32 %v2133_v46, %v480_v23 }
 0x108   : > { %v849_v6 = vmax.f32 %v833_v5, 0.0 }
 0x109   : > { %v529_v41 = vadd.f32 %v2143_v50, %v510_v35 }
 0x10a   : > { %v860_v9 = vpack.c.bf16 %v849_v6, %v848_v7 }
 0x10c   : > { %v475_v10 = vpop.permute.xlu1 %474  ;;  %960 = vmatmul.bf16.gmra.mxu0 %v860_v9 }
 0x10d   : > { %v509_v14 = vmul.f32 %v2133_v46, %v475_v10 }
 0x10e   : > { %v587_v32 = vpop.permute.xlu2 %586 }
 0x10f   : > { %v528_v17 = vadd.f32 %v2143_v50, %v509_v14  ;;  %v611_v43 = vmul.f32 %v2148_v53, %v587_v32 }
 0x111   : > { %v625_v21 = vadd.f32 %v609_v19, %v528_v17  ;;  %v627_v54 = vadd.f32 %v611_v43, %v530_v44 }
 0x113   : > { %v738_v26 = vadd.f32 %v722_v22, %v625_v21 }
 0x114   : > { %v683_v48 = vpop.permute.xlu1 %682 }
 0x115   : > { %v721_v18 = vmul.f32 %v2153_v57, %v683_v48 }
 0x116   : > { %v698_v39 = vpop.permute.xlu2 %697 }
 0x117   : > { %v737_v1 = vadd.f32 %v721_v18, %v624_v20  ;;  %v724_v56 = vmul.f32 %v2153_v57, %v698_v39 }
 0x119   : > { %v834_v28 = vadd.f32 %v818_v24, %v737_v1  ;;  %v740_v63 = vadd.f32 %v724_v56, %v627_v54  ;;  %v1751_v56 = vld [vmem:[%s2680_s6 + $0x28] sm:$0xff] }
 0x11b   : > { %v850_v30 = vmax.f32 %v834_v28, 0.0 }
 0x11d   : > { %v789_v25 = vpop.permute.xlu1 %788 }
 0x11e   : > { %v819_v27 = vmul.f32 %v2157_v60, %v789_v25  ;;  %v490_v55 = vpop.permute.xlu2 %489  ;;  %v801_v25 = vpop.permute.xlu0 %800 }
 0x11f   : > { %v512_v16 = vmul.f32 %v2133_v46, %v490_v55  ;;  %v1747_v55 = vld [vmem:[%s2680_s6 + $0x8] sm:$0xff] }
 0x120   : > { %v835_v29 = vadd.f32 %v819_v27, %v738_v26 }
 0x121   : > { %v531_v18 = vadd.f32 %v2143_v50, %v512_v16 }
 0x122   : > { %v851_v0 = vmax.f32 %v835_v29, 0.0 }
 0x124   : > { %v861_v31 = vpack.c.bf16 %v851_v0, %v850_v30 }
 0x125   : > { %v583_v33 = vpop.permute.xlu1 %582 }
 0x126   : > { %965 = vmatmul.bf16.gmra.mxu0 %v861_v31  ;;  %v610_v37 = vmul.f32 %v2148_v53, %v583_v33 }
 0x127   : > { %v591_v14 = vpop.permute.xlu2 %590 }
 0x128   : > { %v626_v49 = vadd.f32 %v610_v37, %v529_v41  ;;  %v612_v19 = vmul.f32 %v2148_v53, %v591_v14 }
 0x12a   : > { %v628_v24 = vadd.f32 %v612_v19, %v531_v18 }
 0x12e   : > { %v693_v38 = vpop.permute.xlu1 %692 }
 0x12f   : > { %v723_v47 = vmul.f32 %v2153_v57, %v693_v38 }
 0x130   : > { %v708_v1 = vpop.permute.xlu2 %707 }
 0x131   : > { %v739_v59 = vadd.f32 %v723_v47, %v626_v49  ;;  %v726_v28 = vmul.f32 %v2153_v57, %v708_v1  ;;  %v1753_v47 = vld [vmem:[%s2680_s6 + $0x38] sm:$0xff] }
 0x132   : > { %v941_v42 = vpop.f32.mrf.mxu0  ;;  %1121 = vmatpush.bf16.msra.mxu1 %v1753_v47  ;;  %v1757_v47 = vld [vmem:[%s2680_s6 + $0x58] sm:$0xff] }
 0x133   : > { %v2254_v52 = vadd.f32 %v2247_v40, %v941_v42  ;;  %v836_v3 = vadd.f32 %v820_v58, %v739_v59  ;;  %v1752_v42 = vld [vmem:[%s2680_s6 + $0x30] sm:$0xff]  ;;  %v1750_v58 = vld [vmem:[%s2680_s6 + $0x20] sm:$0xff]  ;;  %v1749_v59 = vld [vmem:[%s2680_s6 + $0x18] sm:$0xff] }
 0x135   : > { %v981_v62 = vmax.f32 %v2254_v52, 0.0  ;;  %v852_v8 = vmax.f32 %v836_v3, 0.0 }
 0x136   : > { %1122 = vmatpush.bf16.msra.mxu1 %v1752_v42  ;;  %v1755_v42 = vld [vmem:[%s2680_s6 + $0x48] sm:$0xff] }
 0x137   : > { %v797_v45 = vpop.permute.xlu1 %796  ;;  %997 = vrot.lane.b32.xlu2 %v981_v62, %s1920_s21 }
 0x138   : > { %v821_v2 = vmul.f32 %v2157_v60, %v797_v45 }
 0x13a   : > { %v837_v4 = vadd.f32 %v821_v2, %v740_v63  ;;  %v943_v5 = vpop.f32.mrf.mxu0  ;;  %1123 = vmatpush.bf16.msra.mxu1 %v1751_v56  ;;  %v1748_v63 = vld [vmem:[%s2680_s6 + $0x10] sm:$0xff] }
 0x13b   : > { %v2264_v6 = vadd.f32 %v2247_v40, %v943_v5  ;;  %v1746_v5 = vld [vmem:[%s2680_s6] sm:$0xff] }
 0x13c   : > { %v853_v7 = vmax.f32 %v837_v4, 0.0 }
 0x13d   : > { %v982_v9 = vmax.f32 %v2264_v6, 0.0 }
 0x13e   : > { %v862_v10 = vpack.c.bf16 %v853_v7, %v852_v8  ;;  %1124 = vmatpush.bf16.msra.mxu1 %v1750_v58 }
 0x13f   : > { %999 = vrot.lane.b32.xlu0 %v982_v9, %s1920_s21 }
 0x140   : > { %v495_v11 = vpop.permute.xlu1 %494  ;;  %970 = vmatmul.bf16.gmra.mxu0 %v862_v10 }
 0x141   : > { %v513_v17 = vmul.f32 %v2133_v46, %v495_v11  ;;  %v613_v46 = vmul.f32 %v2148_v53, %v595_v13 }
 0x142   : > { %v946_v12 = vpop.f32.mrf.mxu0  ;;  %1125 = vmatpush.bf16.msra.mxu1 %v1749_v59 }
 0x143   : > { %v2271_v15 = vadd.f32 %v2247_v40, %v946_v12  ;;  %v532_v61 = vadd.f32 %v2143_v50, %v513_v17  ;;  %v822_v50 = vmul.f32 %v2157_v60, %v801_v25 }
 0x145   : > { %v983_v48 = vmax.f32 %v2271_v15, 0.0  ;;  %v629_v27 = vadd.f32 %v613_v46, %v532_v61 }
 0x146   : > { %1126 = vmatpush.bf16.msra.mxu1 %v1748_v63 }
 0x147   : > { %1001 = vrot.lane.b32.xlu1 %v983_v48, %s1920_s21  ;;  %v742_v30 = vadd.f32 %v726_v28, %v629_v27 }
 0x148   : > { %v703_v20 = vpop.permute.xlu1 %702 }
 0x149   : > { %v725_v21 = vmul.f32 %v2153_v57, %v703_v20 }
 0x14a   : > { %v948_v22 = vpop.f32.mrf.mxu0  ;;  %1127 = vmatpush.bf16.msra.mxu1 %v1747_v55 }
 0x14b   : > { %v2284_v23 = vadd.f32 %v2247_v40, %v948_v22  ;;  %v741_v29 = vadd.f32 %v725_v21, %v628_v24 }
 0x14d   : > { %v984_v26 = vmax.f32 %v2284_v23, 0.0  ;;  %v838_v32 = vadd.f32 %v822_v50, %v741_v29 }
 0x14e   : > { %1128 = vmatpush.bf16.msra.mxu1 %v1746_v5 }
 0x14f   : > { %1003 = vrot.lane.b32.xlu2 %v984_v26, %s1920_s21  ;;  %v854_v36 = vmax.f32 %v838_v32, 0.0 }
 0x151   : > { %v805_v0 = vpop.permute.xlu1 %804 }
 0x152   : > { %v823_v31 = vmul.f32 %v2157_v60, %v805_v0 }
 0x154   : > { %v839_v53 = vadd.f32 %v823_v31, %v742_v30 }
 0x155   : > { %v951_v33 = vpop.f32.mrf.mxu0 }
 0x156   : > { %v855_v34 = vmax.f32 %v839_v53, 0.0  ;;  %v2295_v35 = vadd.f32 %v2247_v40, %v951_v33 }
 0x158   : > { %v985_v57 = vmax.f32 %v2295_v35, 0.0  ;;  %v863_v37 = vpack.c.bf16 %v855_v34, %v854_v36 }
 0x15a   : > { %1005 = vrot.lane.b32.xlu0 %v985_v57, %s1920_s21  ;;  %975 = vmatmul.bf16.gmra.mxu0 %v863_v37 }
 0x15d   : > { %v953_v38 = vpop.f32.mrf.mxu0 }
 0x15e   : > { %v2302_v39 = vadd.f32 %v2247_v40, %v953_v38 }
 0x160   : > { %v986_v60 = vmax.f32 %v2302_v39, 0.0  ;;  %v1761_v39 = vld [vmem:[%s2680_s6 + $0x78] sm:$0xff] }
 0x161   : > { %1264 = vmatpush.bf16.msra.mxu2 %v1761_v39 }
 0x162   : > { %1007 = vrot.lane.b32.xlu1 %v986_v60, %s1920_s21 }
 0x16f   : > { %v956_v41 = vpop.f32.mrf.mxu0 }
 0x170   : > { %v2309_v43 = vadd.f32 %v2247_v40, %v956_v41  ;;  %v1760_v41 = vld [vmem:[%s2680_s6 + $0x70] sm:$0xff] }
 0x171   : > { %1265 = vmatpush.bf16.msra.mxu2 %v1760_v41 }
 0x172   : > { %v987_v44 = vmax.f32 %v2309_v43, 0.0  ;;  %v1759_v43 = vld [vmem:[%s2680_s6 + $0x68] sm:$0xff] }
 0x174   : > { %1009 = vrot.lane.b32.xlu2 %v987_v44, %s1920_s21 }
 0x175   : > { %1266 = vmatpush.bf16.msra.mxu2 %v1759_v43 }
 0x177   : > { %v958_v49 = vpop.f32.mrf.mxu0 }
 0x178   : > { %v2322_v51 = vadd.f32 %v2247_v40, %v958_v49  ;;  %v1756_v49 = vld [vmem:[%s2680_s6 + $0x50] sm:$0xff] }
 0x17a   : > { %v988_v54 = vmax.f32 %v2322_v51, 0.0  ;;  %v1754_v51 = vld [vmem:[%s2680_s6 + $0x40] sm:$0xff] }
 0x17c   : > { %1011 = vrot.lane.b32.xlu0 %v988_v54, %s1920_s21 }
 0x189   : > { %v961_v45 = vpop.f32.mrf.mxu0 }
 0x18a   : > { %v2341_v2 = vadd.f32 %v2247_v40, %v961_v45 }
 0x18c   : > { %v989_v3 = vmax.f32 %v2341_v2, 0.0  ;;  %v2468_v2 = vld [vmem:[%s2681_s7] ss:$0 sm:$0xff] }
 0x18e   : > { %1013 = vrot.lane.b32.xlu1 %v989_v3, %s1920_s21 }
 0x191   : > { %v963_v4 = vpop.f32.mrf.mxu0  ;;  %v998_v17 = vpop.permute.xlu2 %997 }
 0x192   : > { %v964_v7 = vadd.f32 %v2247_v40, %v963_v4  ;;  %v2369_v19 = vmul.f32 %v998_v17, %v981_v62 }
 0x194   : > { %v990_v8 = vmax.f32 %v964_v7, 0.0 }
 0x196   : > { %1015 = vrot.lane.b32.xlu2 %v990_v8, %s1920_s21 }
 0x1a3   : > { %v966_v10 = vpop.f32.mrf.mxu0 }
 0x1a4   : > { %v2354_v11 = vadd.f32 %v2247_v40, %v966_v10 }
 0x1a6   : > { %v991_v12 = vmax.f32 %v2354_v11, 0.0 }
 0x1a8   : > { %1017 = vrot.lane.b32.xlu0 %v991_v12, %s1920_s21 }
 0x1a9   : > { %v1004_v46 = vpop.permute.xlu2 %1003 }
 0x1aa   : > { %v2387_v62 = vmul.f32 %v1004_v46, %v984_v26 }
 0x1ab   : > { %v968_v13 = vpop.f32.mrf.mxu0 }
 0x1ac   : > { %v2361_v14 = vadd.f32 %v2247_v40, %v968_v13 }
 0x1ae   : > { %v992_v16 = vmax.f32 %v2361_v14, 0.0 }
 0x1b0   : > { %1019 = vrot.lane.b32.xlu1 %v992_v16, %s1920_s21 }
 0x1b1   : > { %v1000_v18 = vpop.permute.xlu0 %999 }
 0x1b2   : > { %v2373_v20 = vmul.f32 %v1000_v18, %v982_v9 }
 0x1b4   : > { %v1045_v61 = vpack.c.bf16 %v2373_v20, %v2369_v19 }
 0x1b6   : > { %1129 = vmatmul.bf16.vlgmr.msra.gmra.mxu1 %v1045_v61 }
 0x1b9   : > { %v1002_v21 = vpop.permute.xlu1 %1001 }
 0x1ba   : > { %v2382_v24 = vmul.f32 %v1002_v21, %v983_v48 }
 0x1bc   : > { %v1046_v6 = vpack.c.bf16 %v2387_v62, %v2382_v24 }
 0x1bd   : > { %v971_v22 = vpop.f32.mrf.mxu0 }
 0x1be   : > { %v2378_v1 = vadd.f32 %v2247_v40, %v971_v22 }
 0x1c0   : > { %v993_v52 = vmax.f32 %v2378_v1, 0.0 }
 0x1c2   : > { %1021 = vrot.lane.b32.xlu2 %v993_v52, %s1920_s21 }
 0x1c5   : > { %v973_v9 = vpop.f32.mrf.mxu0 }
 0x1c6   : > { %v974_v25 = vadd.f32 %v2247_v40, %v973_v9  ;;  %1134 = vmatmul.bf16.gmra.mxu1 %v1046_v6 }
 0x1c8   : > { %v994_v15 = vmax.f32 %v974_v25, 0.0 }
 0x1ca   : > { %1023 = vrot.lane.b32.xlu0 %v994_v15, %s1920_s21 }
 0x1cc   : > { %v1006_v48 = vpop.permute.xlu0 %1005 }
 0x1cd   : > { %v2398_v23 = vmul.f32 %v1006_v48, %v985_v57 }
 0x1ce   : > { %v1010_v53 = vpop.permute.xlu2 %1009 }
 0x1cf   : > { %v2417_v34 = vmul.f32 %v1010_v53, %v987_v44  ;;  %v1758_v44 = vld [vmem:[%s2680_s6 + $0x60] sm:$0xff] }
 0x1d0   : > { %1267 = vmatpush.bf16.msra.mxu2 %v1758_v44 }
 0x1d4   : > { %v1008_v27 = vpop.permute.xlu1 %1007  ;;  %1268 = vmatpush.bf16.msra.mxu2 %v1757_v47 }
 0x1d5   : > { %v2402_v26 = vmul.f32 %v1008_v27, %v986_v60 }
 0x1d7   : > { %v976_v28 = vpop.f32.mrf.mxu0  ;;  %v1047_v29 = vpack.c.bf16 %v2402_v26, %v2398_v23 }
 0x1d8   : > { %v2407_v50 = vadd.f32 %v2247_v40, %v976_v28  ;;  %1269 = vmatpush.bf16.msra.mxu2 %v1756_v49  ;;  %v1769_v49 = vld [vmem:[%s2682_s8 + $0x38] sm:$0xff] }
 0x1d9   : > { %1139 = vmatmul.bf16.gmra.mxu1 %v1047_v29  ;;  %1405 = vmatpush.bf16.msra.mxu3 %v1769_v49 }
 0x1da   : > { %v995_v0 = vmax.f32 %v2407_v50, 0.0 }
 0x1dc   : > { %1025 = vrot.lane.b32.xlu1 %v995_v0, %s1920_s21  ;;  %1270 = vmatpush.bf16.msra.mxu2 %v1755_v42  ;;  %v1768_v42 = vld [vmem:[%s2682_s8 + $0x30] sm:$0xff] }
 0x1dd   : > { %1406 = vmatpush.bf16.msra.mxu3 %v1768_v42 }
 0x1df   : > { %v978_v30 = vpop.f32.mrf.mxu0 }
 0x1e0   : > { %v979_v31 = vadd.f32 %v2247_v40, %v978_v30  ;;  %1271 = vmatpush.bf16.msra.mxu2 %v1754_v51  ;;  %v1767_v51 = vld [vmem:[%s2682_s8 + $0x28] sm:$0xff] }
 0x1e1   : > { %1407 = vmatpush.bf16.msra.mxu3 %v1767_v51 }
 0x1e2   : > { %v996_v32 = vmax.f32 %v979_v31, 0.0 }
 0x1e4   : > { %1027 = vrot.lane.b32.xlu2 %v996_v32, %s1920_s21  ;;  %s1501_s21 = scalar_lea.hbm %s2684_s10, %s1770_s28 }
 0x1e5   : > { %s1504_s20 = sshll.u32 %s1501_s21, 4  ;;  %s1505_s20 = int_to_ptr.hbm [resolvable:$true] %s1504_s20 }
 0x1e6   : > { %s1868_s12 = sshra.s32 %s1505_s20, 4  ;;  %s1869_s12 = int_to_ptr.hbm [resolvable:$true] %s1868_s12 }
 0x1e7   : > { %s1870_s25 = scalar_lea.hbm %s1869_s12, 128  ;;  %p1875_p0 = scmp.lt.s32.totalorder %s1869_s12, %s2684_s10 }
 0x1e8   : > { %p1871_p11 = scmp.ne.s32.totalorder %s1869_s12, %s1870_s25  ;;  %p1876_p1 = scmp.lt.s32.totalorder %s1874_s30, %s1870_s25 }
 0x1ea   : > { %p1872_p12 = pnand %p1871_p11, %p2016_p5  ;;  %p1877_p2 = por %p1876_p1, %p1875_p0 }
 0x1ec   : > { %p1873_p13 = pneg %p1872_p12 }
 0x1ee   : > { %v1012_v33 = vpop.permute.xlu0 %1011  ;;  %p1878_p3 = pnand %p1877_p2, %p1873_p13 }
 0x1ef   : > { %v2421_v35 = vmul.f32 %v1012_v33, %v988_v54 }
 0x1f0   : > { %v1016_v57 = vpop.permute.xlu2 %1015 }
 0x1f1   : > { %v1048_v36 = vpack.c.bf16 %v2421_v35, %v2417_v34  ;;  %v2425_v40 = vmul.f32 %v1016_v57, %v990_v8 }
 0x1f3   : > { %1144 = vmatmul.bf16.gmra.mxu1 %v1048_v36 }
 0x200   : > { %v1014_v37 = vpop.permute.xlu1 %1013 }
 0x201   : > { %v2427_v38 = vmul.f32 %v1014_v37, %v989_v3 }
 0x203   : > { %v1049_v60 = vpack.c.bf16 %v2425_v40, %v2427_v38 }
 0x205   : > { %1149 = vmatmul.bf16.gmra.mxu1 %v1049_v60 }
 0x21a   : > { %v1018_v54 = vpop.permute.xlu0 %1017 }
 0x21b   : > { %v2457_v58 = vmul.f32 %v1018_v54, %v991_v12  ;;  %v1766_v54 = vld [vmem:[%s2682_s8 + $0x20] sm:$0xff] }
 0x21c   : > { %v1022_v3 = vpop.permute.xlu2 %1021  ;;  %1408 = vmatpush.bf16.msra.mxu3 %v1766_v54 }
 0x21d   : > { %v2474_v8 = vmul.f32 %v1022_v3, %v993_v52 }
 0x222   : > { %v1020_v56 = vpop.permute.xlu1 %1019 }
 0x223   : > { %v2461_v59 = vmul.f32 %v1020_v56, %v992_v16  ;;  %v1765_v56 = vld [vmem:[%s2682_s8 + $0x18] sm:$0xff] }
 0x224   : > { %1409 = vmatpush.bf16.msra.mxu3 %v1765_v56 }
 0x225   : > { %v1050_v45 = vpack.c.bf16 %v2461_v59, %v2457_v58 }
 0x227   : > { %1154 = vmatmul.bf16.gmra.mxu1 %v1050_v45 }
 0x233   : > { %v1130_v63 = vpop.f32.mrf.mxu1 }
 0x234   : > { %v1131_v55 = vadd.f32 %v2468_v2, %v1130_v63  ;;  %v1764_v63 = vld [vmem:[%s2682_s8 + $0x10] sm:$0xff] }
 0x235   : > { %1410 = vmatpush.bf16.msra.mxu3 %v1764_v63 }
 0x236   : > { %v1170_v11 = vmax.f32 %v1131_v55, 0.0  ;;  %v1763_v55 = vld [vmem:[%s2682_s8 + $0x8] sm:$0xff] }
 0x239   : > { %1411 = vmatpush.bf16.msra.mxu3 %v1763_v55 }
 0x23b   : > { %v1132_v4 = vpop.f32.mrf.mxu1 }
 0x23c   : > { %v1133_v5 = vadd.f32 %v2468_v2, %v1132_v4  ;;  %v1024_v7 = vpop.permute.xlu0 %1023 }
 0x23d   : > { %v2476_v10 = vmul.f32 %v1024_v7, %v994_v15 }
 0x23e   : > { %v1171_v12 = vmax.f32 %v1133_v5, 0.0  ;;  %v1028_v61 = vpop.permute.xlu2 %1027 }
 0x23f   : > { %v1051_v13 = vpack.c.bf16 %v2476_v10, %v2474_v8  ;;  %v2482_v52 = vmul.f32 %v1028_v61, %v996_v32 }
 0x240   : > { %v1186_v14 = vpack.c.bf16 %v1171_v12, %v1170_v11  ;;  %v1762_v12 = vld [vmem:[%s2682_s8] sm:$0xff] }
 0x241   : > { %1159 = vmatmul.bf16.gmra.mxu1 %v1051_v13  ;;  %1412 = vmatpush.bf16.msra.mxu3 %v1762_v12 }
 0x242   : > { %1272 = vmatmul.bf16.vlgmr.msra.gmra.mxu2 %v1186_v14 }
 0x243   : > { %v1135_v16 = vpop.f32.mrf.mxu1 }
 0x244   : > { %v1136_v17 = vadd.f32 %v2468_v2, %v1135_v16 }
 0x246   : > { %v1172_v22 = vmax.f32 %v1136_v17, 0.0 }
 0x24b   : > { %v1137_v18 = vpop.f32.mrf.mxu1 }
 0x24c   : > { %v1138_v21 = vadd.f32 %v2468_v2, %v1137_v18 }
 0x24e   : > { %v1173_v1 = vmax.f32 %v1138_v21, 0.0  ;;  %v1026_v46 = vpop.permute.xlu1 %1025  ;;  %v2527_v21 = vld [vmem:[%s2681_s7 + $0x1] ss:$0 sm:$0xff] }
 0x24f   : > { %v2486_v6 = vmul.f32 %v1026_v46, %v995_v0 }
 0x250   : > { %v1187_v9 = vpack.c.bf16 %v1173_v1, %v1172_v22 }
 0x251   : > { %v1052_v25 = vpack.c.bf16 %v2482_v52, %v2486_v6 }
 0x252   : > { %1277 = vmatmul.bf16.gmra.mxu2 %v1187_v9 }
 0x253   : > { %1164 = vmatmul.bf16.gmra.mxu1 %v1052_v25 }
 0x256   : > { %v1140_v15 = vpop.f32.mrf.mxu1 }
 0x257   : > { %v1141_v48 = vadd.f32 %v2468_v2, %v1140_v15 }
 0x259   : > { %v1174_v29 = vmax.f32 %v1141_v48, 0.0 }
 0x25e   : > { %v1142_v27 = vpop.f32.mrf.mxu1 }
 0x25f   : > { %v1143_v28 = vadd.f32 %v2468_v2, %v1142_v27 }
 0x261   : > { %v1175_v30 = vmax.f32 %v1143_v28, 0.0 }
 0x263   : > { %v1188_v31 = vpack.c.bf16 %v1175_v30, %v1174_v29 }
 0x265   : > { %1282 = vmatmul.bf16.gmra.mxu2 %v1188_v31 }
 0x270   : > { %v1145_v32 = vpop.f32.mrf.mxu1 }
 0x271   : > { %v1146_v50 = vadd.f32 %v2468_v2, %v1145_v32 }
 0x273   : > { %v1176_v33 = vmax.f32 %v1146_v50, 0.0 }
 0x278   : > { %v1147_v0 = vpop.f32.mrf.mxu1 }
 0x279   : > { %v1148_v53 = vadd.f32 %v2468_v2, %v1147_v0 }
 0x27b   : > { %v1177_v36 = vmax.f32 %v1148_v53, 0.0 }
 0x27d   : > { %v1189_v57 = vpack.c.bf16 %v1177_v36, %v1176_v33 }
 0x27f   : > { %1287 = vmatmul.bf16.gmra.mxu2 %v1189_v57 }
 0x282   : > { %v1150_v37 = vpop.f32.mrf.mxu1 }
 0x283   : > { %v1151_v39 = vadd.f32 %v2468_v2, %v1150_v37 }
 0x285   : > { %v1178_v43 = vmax.f32 %v1151_v39, 0.0 }
 0x28a   : > { %v1152_v60 = vpop.f32.mrf.mxu1 }
 0x28b   : > { %v1153_v41 = vadd.f32 %v2468_v2, %v1152_v60 }
 0x28d   : > { %v1179_v44 = vmax.f32 %v1153_v41, 0.0 }
 0x28f   : > { %v1190_v47 = vpack.c.bf16 %v1179_v44, %v1178_v43 }
 0x291   : > { %1292 = vmatmul.bf16.gmra.mxu2 %v1190_v47 }
 0x2a4   : > { %v1155_v45 = vpop.f32.mrf.mxu1 }
 0x2a5   : > { %v1156_v3 = vadd.f32 %v2468_v2, %v1155_v45 }
 0x2a7   : > { %v1180_v7 = vmax.f32 %v1156_v3, 0.0 }
 0x2ac   : > { %v1157_v4 = vpop.f32.mrf.mxu1 }
 0x2ad   : > { %v1158_v5 = vadd.f32 %v2468_v2, %v1157_v4 }
 0x2af   : > { %v1181_v11 = vmax.f32 %v1158_v5, 0.0 }
 0x2b1   : > { %v1191_v13 = vpack.c.bf16 %v1181_v11, %v1180_v7 }
 0x2b3   : > { %1297 = vmatmul.bf16.gmra.mxu2 %v1191_v13 }
 0x2be   : > { %v1160_v14 = vpop.f32.mrf.mxu1 }
 0x2bf   : > { %v1161_v16 = vadd.f32 %v2468_v2, %v1160_v14 }
 0x2c1   : > { %v1182_v22 = vmax.f32 %v1161_v16, 0.0 }
 0x2c5   : > { %v1273_v17 = vpop.f32.mrf.mxu2 }
 0x2c6   : > { %v1162_v18 = vpop.f32.mrf.mxu1  ;;  %v1274_v9 = vadd.f32 %v2527_v21, %v1273_v17 }
 0x2c7   : > { %v1163_v61 = vadd.f32 %v2468_v2, %v1162_v18 }
 0x2c8   : > { %v1313_v48 = vmax.f32 %v1274_v9, 0.0 }
 0x2c9   : > { %v1183_v1 = vmax.f32 %v1163_v61, 0.0 }
 0x2cb   : > { %v1192_v46 = vpack.c.bf16 %v1183_v1, %v1182_v22 }
 0x2cd   : > { %v1275_v25 = vpop.f32.mrf.mxu2  ;;  %1302 = vmatmul.bf16.gmra.mxu2 %v1192_v46 }
 0x2ce   : > { %v1276_v15 = vadd.f32 %v2527_v21, %v1275_v25  ;;  %v1454_v25 = vlaneseq }
 0x2d0   : > { %v1314_v27 = vmax.f32 %v1276_v15, 0.0  ;;  %v1165_v28 = vpop.f32.mrf.mxu1 }
 0x2d1   : > { %v1166_v31 = vadd.f32 %v2468_v2, %v1165_v28 }
 0x2d2   : > { %v1329_v29 = vpack.c.bf16 %v1314_v27, %v1313_v48  ;;  %v2544_v48 = vand.u32 127, %v1454_v25  ;;  %v2549_v27 = vld [vmem:[%s2683_s9] ss:$0 sm:$0xff] }
 0x2d3   : > { %v1184_v0 = vmax.f32 %v1166_v31, 0.0 }
 0x2d4   : > { %1413 = vmatmul.bf16.vlgmr.msra.gmra.mxu3 %v1329_v29  ;;  %vm1456_vm0 = vcmp.lt.s32.totalorder %v2544_v48, 64 }
 0x2d5   : > { %v1278_v30 = vpop.f32.mrf.mxu2 }
 0x2d6   : > { %v1279_v33 = vadd.f32 %v2527_v21, %v1278_v30 }
 0x2d8   : > { %v1167_v32 = vpop.f32.mrf.mxu1  ;;  %v1315_v39 = vmax.f32 %v1279_v33, 0.0 }
 0x2d9   : > { %v1168_v50 = vadd.f32 %v2468_v2, %v1167_v32 }
 0x2db   : > { %v1185_v53 = vmax.f32 %v1168_v50, 0.0 }
 0x2dd   : > { %v1280_v36 = vpop.f32.mrf.mxu2  ;;  %v1193_v57 = vpack.c.bf16 %v1185_v53, %v1184_v0 }
 0x2de   : > { %v1281_v37 = vadd.f32 %v2527_v21, %v1280_v36 }
 0x2df   : > { %1307 = vmatmul.bf16.gmra.mxu2 %v1193_v57 }
 0x2e0   : > { %v1316_v60 = vmax.f32 %v1281_v37, 0.0 }
 0x2e2   : > { %v1330_v41 = vpack.c.bf16 %v1316_v60, %v1315_v39 }
 0x2e4   : > { %1418 = vmatmul.bf16.gmra.mxu3 %v1330_v41 }
 0x2e8   : > { %v1283_v43 = vpop.f32.mrf.mxu2 }
 0x2e9   : > { %v1284_v44 = vadd.f32 %v2527_v21, %v1283_v43 }
 0x2eb   : > { %v1317_v2 = vmax.f32 %v1284_v44, 0.0 }
 0x2f0   : > { %v1285_v47 = vpop.f32.mrf.mxu2 }
 0x2f1   : > { %v1286_v49 = vadd.f32 %v2527_v21, %v1285_v47 }
 0x2f3   : > { %v1318_v42 = vmax.f32 %v1286_v49, 0.0 }
 0x2f5   : > { %v1331_v51 = vpack.c.bf16 %v1318_v42, %v1317_v2 }
 0x2f7   : > { %1423 = vmatmul.bf16.gmra.mxu3 %v1331_v51 }
 0x302   : > { %v1288_v54 = vpop.f32.mrf.mxu2 }
 0x303   : > { %v1289_v56 = vadd.f32 %v2527_v21, %v1288_v54 }
 0x305   : > { %v1319_v3 = vmax.f32 %v1289_v56, 0.0 }
 0x30a   : > { %v1290_v45 = vpop.f32.mrf.mxu2 }
 0x30b   : > { %v1291_v63 = vadd.f32 %v2527_v21, %v1290_v45 }
 0x30d   : > { %v1320_v55 = vmax.f32 %v1291_v63, 0.0 }
 0x30f   : > { %v1332_v4 = vpack.c.bf16 %v1320_v55, %v1319_v3 }
 0x311   : > { %1428 = vmatmul.bf16.gmra.mxu3 %v1332_v4 }
 0x314   : > { %v1293_v5 = vpop.f32.mrf.mxu2 }
 0x315   : > { %v1294_v7 = vadd.f32 %v2527_v21, %v1293_v5 }
 0x317   : > { %v1321_v13 = vmax.f32 %v1294_v7, 0.0 }
 0x31c   : > { %v1295_v11 = vpop.f32.mrf.mxu2 }
 0x31d   : > { %v1296_v12 = vadd.f32 %v2527_v21, %v1295_v11 }
 0x31f   : > { %v1322_v14 = vmax.f32 %v1296_v12, 0.0 }
 0x321   : > { %v1333_v16 = vpack.c.bf16 %v1322_v14, %v1321_v13 }
 0x323   : > { %1433 = vmatmul.bf16.gmra.mxu3 %v1333_v16 }
 0x336   : > { %v1298_v17 = vpop.f32.mrf.mxu2 }
 0x337   : > { %v1299_v18 = vadd.f32 %v2527_v21, %v1298_v17 }
 0x339   : > { %v1323_v1 = vmax.f32 %v1299_v18, 0.0 }
 0x33e   : > { %v1300_v61 = vpop.f32.mrf.mxu2 }
 0x33f   : > { %v1301_v22 = vadd.f32 %v2527_v21, %v1300_v61 }
 0x341   : > { %v1324_v46 = vmax.f32 %v1301_v22, 0.0 }
 0x343   : > { %v1334_v9 = vpack.c.bf16 %v1324_v46, %v1323_v1 }
 0x345   : > { %1438 = vmatmul.bf16.gmra.mxu3 %v1334_v9 }
 0x350   : > { %v1303_v15 = vpop.f32.mrf.mxu2 }
 0x351   : > { %v1304_v28 = vadd.f32 %v2527_v21, %v1303_v15 }
 0x353   : > { %v1325_v0 = vmax.f32 %v1304_v28, 0.0 }
 0x357   : > { %v1414_v29 = vpop.f32.mrf.mxu3 }
 0x358   : > { %v1415_v30 = vadd.f32 %v2549_v27, %v1414_v29  ;;  %v1305_v31 = vpop.f32.mrf.mxu2 }
 0x359   : > { %v1306_v32 = vadd.f32 %v2527_v21, %v1305_v31 }
 0x35a   : > { %v1457_v50 = vsel %vm1456_vm0, %v2369_v19, %v1415_v30 }
 0x35b   : > { %1473 = vst [vmem:[%s2560_s27] sm:$0xff] %v1457_v50  ;;  %v1326_v53 = vmax.f32 %v1306_v32, 0.0 }
 0x35d   : > { %v1335_v33 = vpack.c.bf16 %v1326_v53, %v1325_v0 }
 0x35f   : > { %v1416_v36 = vpop.f32.mrf.mxu3  ;;  %1443 = vmatmul.bf16.gmra.mxu3 %v1335_v33 }
 0x360   : > { %v1417_v57 = vadd.f32 %v2549_v27, %v1416_v36 }
 0x362   : > { %v1458_v37 = vsel %vm1456_vm0, %v2373_v20, %v1417_v57  ;;  %v1308_v39 = vpop.f32.mrf.mxu2 }
 0x363   : > { %1474 = vst [vmem:[%s2560_s27 + $0x8] sm:$0xff] %v1458_v37  ;;  %v1309_v41 = vadd.f32 %v2527_v21, %v1308_v39 }
 0x365   : > { %v1327_v49 = vmax.f32 %v1309_v41, 0.0 }
 0x367   : > { %v1419_v19 = vpop.f32.mrf.mxu3 }
 0x368   : > { %v1420_v60 = vadd.f32 %v2549_v27, %v1419_v19 }
 0x36a   : > { %v1459_v43 = vsel %vm1456_vm0, %v2382_v24, %v1420_v60  ;;  %v1310_v44 = vpop.f32.mrf.mxu2 }
 0x36b   : > { %1475 = vst [vmem:[%s2560_s27 + $0x10] sm:$0xff] %v1459_v43  ;;  %v1311_v47 = vadd.f32 %v2527_v21, %v1310_v44 }
 0x36d   : > { %v1328_v20 = vmax.f32 %v1311_v47, 0.0 }
 0x36f   : > { %v1421_v2 = vpop.f32.mrf.mxu3  ;;  %v1336_v42 = vpack.c.bf16 %v1328_v20, %v1327_v49 }
 0x370   : > { %v1422_v51 = vadd.f32 %v2549_v27, %v1421_v2 }
 0x371   : > { %1448 = vmatmul.bf16.gmra.mxu3 %v1336_v42 }
 0x372   : > { %v1460_v54 = vsel %vm1456_vm0, %v2387_v62, %v1422_v51 }
 0x373   : > { %1476 = vst [vmem:[%s2560_s27 + $0x18] sm:$0xff] %v1460_v54 }
 0x37a   : > { %v1424_v24 = vpop.f32.mrf.mxu3 }
 0x37b   : > { %v1425_v56 = vadd.f32 %v2549_v27, %v1424_v24 }
 0x37d   : > { %v1461_v21 = vsel %vm1456_vm0, %v2398_v23, %v1425_v56 }
 0x37e   : > { %1477 = vst [vmem:[%s2560_s27 + $0x20] sm:$0xff] %v1461_v21 }
 0x382   : > { %v1426_v45 = vpop.f32.mrf.mxu3 }
 0x383   : > { %v1427_v63 = vadd.f32 %v2549_v27, %v1426_v45 }
 0x385   : > { %v1462_v3 = vsel %vm1456_vm0, %v2402_v26, %v1427_v63 }
 0x386   : > { %1478 = vst [vmem:[%s2560_s27 + $0x28] sm:$0xff] %v1462_v3 }
 0x394   : > { %v1429_v62 = vpop.f32.mrf.mxu3 }
 0x395   : > { %v1430_v55 = vadd.f32 %v2549_v27, %v1429_v62 }
 0x397   : > { %v1463_v4 = vsel %vm1456_vm0, %v2417_v34, %v1430_v55 }
 0x398   : > { %1479 = vst [vmem:[%s2560_s27 + $0x30] sm:$0xff] %v1463_v4 }
 0x39c   : > { %v1431_v23 = vpop.f32.mrf.mxu3 }
 0x39d   : > { %v1432_v5 = vadd.f32 %v2549_v27, %v1431_v23 }
 0x39f   : > { %v1464_v7 = vsel %vm1456_vm0, %v2421_v35, %v1432_v5 }
 0x3a0   : > { %1480 = vst [vmem:[%s2560_s27 + $0x38] sm:$0xff] %v1464_v7 }
 0x3a6   : > { %v1434_v26 = vpop.f32.mrf.mxu3 }
 0x3a7   : > { %v1435_v11 = vadd.f32 %v2549_v27, %v1434_v26 }
 0x3a9   : > { %v1465_v12 = vsel %vm1456_vm0, %v2427_v38, %v1435_v11 }
 0x3aa   : > { %1481 = vst [vmem:[%s2560_s27 + $0x40] sm:$0xff] %v1465_v12 }
 0x3ae   : > { %v1436_v34 = vpop.f32.mrf.mxu3 }
 0x3af   : > { %v1437_v13 = vadd.f32 %v2549_v27, %v1436_v34 }
 0x3b1   : > { %v1466_v14 = vsel %vm1456_vm0, %v2425_v40, %v1437_v13 }
 0x3b2   : > { %1482 = vst [vmem:[%s2560_s27 + $0x48] sm:$0xff] %v1466_v14 }
 0x3c8   : > { %v1439_v35 = vpop.f32.mrf.mxu3 }
 0x3c9   : > { %v1440_v16 = vadd.f32 %v2549_v27, %v1439_v35 }
 0x3cb   : > { %v1467_v17 = vsel %vm1456_vm0, %v2457_v58, %v1440_v16 }
 0x3cc   : > { %1483 = vst [vmem:[%s2560_s27 + $0x50] sm:$0xff] %v1467_v17 }
 0x3d0   : > { %v1441_v38 = vpop.f32.mrf.mxu3 }
 0x3d1   : > { %v1442_v18 = vadd.f32 %v2549_v27, %v1441_v38 }
 0x3d3   : > { %v1468_v61 = vsel %vm1456_vm0, %v2461_v59, %v1442_v18 }
 0x3d4   : > { %1484 = vst [vmem:[%s2560_s27 + $0x58] sm:$0xff] %v1468_v61 }
 0x3e2   : > { %v1444_v40 = vpop.f32.mrf.mxu3 }
 0x3e3   : > { %v1445_v22 = vadd.f32 %v2549_v27, %v1444_v40 }
 0x3e5   : > { %v1469_v1 = vsel %vm1456_vm0, %v2474_v8, %v1445_v22 }
 0x3e6   : > { %1485 = vst [vmem:[%s2560_s27 + $0x60] sm:$0xff] %v1469_v1 }
 0x3ea   : > { %v1446_v58 = vpop.f32.mrf.mxu3 }
 0x3eb   : > { %v1447_v46 = vadd.f32 %v2549_v27, %v1446_v58 }
 0x3ed   : > { %v1470_v9 = vsel %vm1456_vm0, %v2476_v10, %v1447_v46 }
 0x3ee   : > { %1486 = vst [vmem:[%s2560_s27 + $0x68] sm:$0xff] %v1470_v9 }
 0x3f4   : > { %v1449_v59 = vpop.f32.mrf.mxu3 }
 0x3f5   : > { %v1450_v25 = vadd.f32 %v2549_v27, %v1449_v59 }
 0x3f7   : > { %v1471_v15 = vsel %vm1456_vm0, %v2486_v6, %v1450_v25 }
 0x3f8   : > { %1487 = vst [vmem:[%s2560_s27 + $0x70] sm:$0xff] %v1471_v15 }
 0x3fc   : > { %v1451_v8 = vpop.f32.mrf.mxu3 }
 0x3fd   : > { %v1452_v10 = vadd.f32 %v2549_v27, %v1451_v8 }
 0x3ff   : > { %v1472_v28 = vsel %vm1456_vm0, %v2482_v52, %v1452_v10 }
 0x400   : > { %1488 = vst [vmem:[%s2560_s27 + $0x78] sm:$0xff] %v1472_v28 }
 0x401   : > { %1881 = shalt.err (!%p1878_p3)
}
 0x402   : > { %s1921_s29 = smov 128   ;;  %s1922_s27 = smov 8  }
 0x403   : > { %1771 = dma.vmem_to_hbm [thread:$0]  (%p2016_p5), %s1503_s18, 2048, %s1505_s20, %s1490_s17, %s1921_s29, %s1921_s29, %s1922_s27  }
 0x404 PF: > { %p1777_p4 = scmp.ge.s32.totalorder %s1916_s16, 2  ;;  %s1519_s26 = sand.u32 1, %s1904_s13  }
 0x405   : > { %s1520_s28 = scalar_lea.sflag [#allocation3], %s1519_s26 }
 0x406   : > { %p1774_p7 = pnand %p1777_p4, %p2020_p6 }
 0x408   : > { %p1775_p8 = pneg %p1774_p7 }
 0x40a   : > { %1899 = dma.done.wait (%p1775_p8), %s1520_s28, 2048  }
 0x40b   : > { %1901 = vsyncadd (%p1775_p8), %s1520_s28, 4294965248  ;;  %p20_p9 = scmp.ge.s32.totalorder %s2003_s19, 4   ;;  %s2687_s13 = smov %s1908_s14 }
 0x40c   : > { %s2688_s14 = smov %s1912_s15  ;;  %s2689_s15 = smov %s2014_s22 }
 0x40d   : > { %s2690_s16 = smov %s2003_s19  ;;  %22 = sbr.rel (!%p20_p9) target bundleno = 3 (0x3), region = 100 }
 0x412   :  { %1526 = vsyncpa [#allocation3], 1 }
 0x413   :  { %1528 = vsyncpa [#allocation3 + $0x1], 1 }

// kernel: tpu_custom_call.1
= control target key start
LH: loop header
LB: loop body
LE: loop exit
PB: predicated region body
PF: predicated region fallthrough
CT: control target
= control target key end

     0   :  { %15 = vsyncpa [#allocation3], 0  ;;  %s2674_s0 = inlined_call_operand.vmem [shape: f32[256,2], index: 0, kind: input, shape index: {}]   ;;  %s2675_s1 = inlined_call_operand.vmem [shape: f32[256,2], index: 1, kind: input, shape index: {}]   ;;  %s2676_s2 = inlined_call_operand.vmem [shape: f32[4,128], index: 2, kind: input, shape index: {}]   ;;  %s2677_s3 = inlined_call_operand.vmem [shape: f32[1,128], index: 3, kind: input, shape index: {}]   ;;  %s2678_s4 = inlined_call_operand.vmem [shape: bf16[1,128,128], index: 4, kind: input, shape index: {}]   ;;  %s2679_s5 = inlined_call_operand.vmem [shape: f32[1,1,128], index: 5, kind: input, shape index: {}]   ;;  %s2680_s6 = inlined_call_operand.vmem [shape: bf16[2,128,128], index: 6, kind: input, shape index: {}]   ;;  %s2681_s7 = inlined_call_operand.vmem [shape: f32[2,1,128], index: 7, kind: input, shape index: {}]   ;;  %s2682_s8 = inlined_call_operand.vmem [shape: bf16[128,128], index: 8, kind: input, shape index: {}]   ;;  %s2683_s9 = inlined_call_operand.vmem [shape: f32[1,128], index: 9, kind: input, shape index: {}]   ;;  %s2684_s10 = inlined_call_operand.hbm [shape: f32[256,128], index: 10, kind: output, shape index: {}]  }
   0x1   :  { %17 = vsyncpa [#allocation3 + $0x1], 0  ;;  %s1978_s13 = smov 0   ;;  %s1980_s14 = smov 0  }
   0x2   :  { %s1982_s15 = smov 0   ;;  %s1984_s16 = smov 0  }
   0x3 LB: > { %s1999_s17 = sadd.s32 4294967295, %s1916_s16   ;;  %s1579_s18 = sadd.s32 4294967294, %s1916_s16   ;;  %s1916_s16 = sphi %s1984_s16, %s2690_s16   ;;  %s1912_s15 = sphi %s1982_s15, %s2689_s15   ;;  %s1908_s14 = sphi %s1980_s14, %s2688_s14   ;;  %s1904_s13 = sphi %s1978_s13, %s2687_s13  }
   0x4   : > { %s2003_s19 = sadd.s32 1, %s1916_s16   ;;  %s250_s20 = sadd.s32 1, %s1912_s15 }
   0x5   : > { %s247_s21 = ssub.s32 %s1916_s16, %s2003_s19  ;;  %p260_p0 = scmp.ne.s32.totalorder %s1912_s15, %s1908_s14 }
   0x6   : > { %p248_p1 = scmp.eq.s32.totalorder %s247_s21, 0  ;;  %p261_p2 = scmp.eq.s32.totalorder %s1999_s17, 1 }
   0x7   : > { %p266_p3 = scmp.ne.s32.totalorder %s1908_s14, %s1904_s13  ;;  %p267_p4 = scmp.eq.s32.totalorder %s1579_s18, 1 }
   0x8   : > { %s2014_s22 = scalar_select %p248_p1, %s1912_s15, %s250_s20  }
   0x9   : > { %p2016_p5 = por %p261_p2, %p260_p0  ;;  %p2020_p6 = por %p267_p4, %p266_p3 }
   0xa   : > { %p1582_p7 = scmp.ge.s32.totalorder %s1916_s16, 1  ;;  %p327_p8 = scmp.lt.s32.totalorder %s1916_s16, 3 }
   0xc   : > { %p328_p9 = pnand %p1582_p7, %p327_p8 }
   0xd   : > { %s1584_s25 = sshll.u32 (!%p328_p9), %s1999_s17, 4  ;;  %s1920_s21 = smov (!%p328_p9), 64  }
   0xe   : > { %331 = sbr.rel (%p328_p9) target bundleno = 1028 (0x404), region = 60  ;;  %p371_p10 = scmp.lt.s32.totalorder (!%p328_p9), %s1584_s25, 31 }
   0xf   : > { %s1770_s28 = sshll.u32 (!%p328_p9), %s1999_s17, 7  ;;  %s1874_s30 = scalar_lea.hbm (!%p328_p9), %s2684_s10, 256 }
  0x13   : > { %v1918_v0 = vmov 1   ;;  %v1919_v1 = vmov 0   ;;  %s2692_s25 = smov (!%p371_p10, %s1584_s25), 31  ;;  %v1745_v22 = vld [vmem:[%s2678_s4 + $0x38] sm:$0xff]  ;;  %v1744_v25 = vld [vmem:[%s2678_s4 + $0x30] sm:$0xff]  ;;  %v1743_v26 = vld [vmem:[%s2678_s4 + $0x28] sm:$0xff] }
  0x14   : > { %1816 = vset.pattern.permute.xlu1 %v1918_v0  ;;  %1817 = vset.pattern.permute.xlu2 %v1919_v1  ;;  %s1585_s26 = sshll.u32 %s2692_s25, 3  ;;  %v1742_v28 = vld [vmem:[%s2678_s4 + $0x20] sm:$0xff]  ;;  %v1741_v29 = vld [vmem:[%s2678_s4 + $0x18] sm:$0xff]  ;;  %v1740_v31 = vld [vmem:[%s2678_s4 + $0x10] sm:$0xff] }
  0x15   : > { %1815 = vset.pattern.permute.xlu0 %v1919_v1  ;;  %s2033_s29 = scalar_lea.vmem %s2675_s1, %s1585_s26  ;;  %s2038_s12 = scalar_lea.vmem %s2674_s0, %s1585_s26  ;;  %932 = vmatpush.bf16.msra.mxu0 %v1745_v22  ;;  %v1739_v35 = vld [vmem:[%s2678_s4 + $0x8] sm:$0xff]  ;;  %v1738_v38 = vld [vmem:[%s2678_s4] sm:$0xff] }
  0x16   : > { %v399_v2 = vld [vmem:[%s2033_s29] sm:$0xff]  ;;  %v400_v4 = vld [vmem:[%s2033_s29 + $0x8] sm:$0xff]  ;;  %v385_v6 = vld [vmem:[%s2038_s12 + $0x10] sm:$0xff] }
  0x17   : > { %v383_v3 = vld [vmem:[%s2038_s12] sm:$0xff]  ;;  %632 = vperm.xlu2 %1817, %v399_v2   ;;  %v384_v5 = vld [vmem:[%s2038_s12 + $0x8] sm:$0xff]  ;;  %v386_v9 = vld [vmem:[%s2038_s12 + $0x18] sm:$0xff] }
  0x18   : > { %534 = vperm.xlu1 %1816, %v383_v3   ;;  %419 = vperm.xlu0 %1815, %v383_v3   ;;  %v388_v7 = vld [vmem:[%s2038_s12 + $0x28] sm:$0xff]  ;;  %v401_v10 = vld [vmem:[%s2033_s29 + $0x10] sm:$0xff]  ;;  %v402_v11 = vld [vmem:[%s2033_s29 + $0x18] sm:$0xff] }
  0x19   : > { %v2047_v8 = vld [vmem:[%s2038_s12 + $0x48] sm:$0xff]  ;;  %v387_v12 = vld [vmem:[%s2038_s12 + $0x20] sm:$0xff]  ;;  %v390_v15 = vld [vmem:[%s2038_s12 + $0x38] sm:$0xff]  ;;  %933 = vmatpush.bf16.msra.mxu0 %v1744_v25 }
  0x1a   : > { %v403_v13 = vld [vmem:[%s2033_s29 + $0x20] sm:$0xff]  ;;  %v404_v14 = vld [vmem:[%s2033_s29 + $0x28] sm:$0xff]  ;;  %v389_v16 = vld [vmem:[%s2038_s12 + $0x30] sm:$0xff] }
  0x1b   : > { %v405_v17 = vld [vmem:[%s2033_s29 + $0x30] sm:$0xff]  ;;  %v407_v18 = vld [vmem:[%s2033_s29 + $0x40] sm:$0xff]  ;;  %v406_v19 = vld [vmem:[%s2033_s29 + $0x38] sm:$0xff] }
  0x1c   : > { %v394_v20 = vld [vmem:[%s2038_s12 + $0x58] sm:$0xff]  ;;  %v391_v21 = vld [vmem:[%s2038_s12 + $0x40] sm:$0xff]  ;;  %v409_v24 = vld [vmem:[%s2033_s29 + $0x50] sm:$0xff] }
  0x1d   : > { %934 = vmatpush.bf16.msra.mxu0 %v1743_v26  ;;  %v408_v30 = vld [vmem:[%s2033_s29 + $0x48] sm:$0xff]  ;;  %v393_v37 = vld [vmem:[%s2038_s12 + $0x50] sm:$0xff]  ;;  %v2123_v42 = vld [vmem:[%s2033_s29 + $0x60] sm:$0xff] }
  0x1e   : > { %v2111_v36 = vld [vmem:[%s2038_s12 + $0x68] sm:$0xff]  ;;  %v415_v43 = vld [vmem:[%s2676_s2] sm:$0xf]  ;;  %v2136_v48 = vld [vmem:[%s2038_s12 + $0x78] sm:$0xff] }
  0x1f   : > { %637 = vperm.xlu2 %1817, %v400_v4   ;;  %v2133_v46 = vperm.slane %v415_v43, 0  ;;  %v2143_v50 = vld [vmem:[%s2677_s3] ss:$0 sm:$0xff]  ;;  %v410_v52 = vld [vmem:[%s2033_s29 + $0x58] sm:$0xff]  ;;  %v2148_v53 = vperm.slane %v415_v43, 1  ;;  %v2153_v57 = vperm.slane %v415_v43, 2 }
  0x20   : > { %538 = vperm.xlu1 %1816, %v384_v5   ;;  %424 = vperm.xlu0 %1815, %v384_v5   ;;  %v2157_v60 = vperm.slane %v415_v43, 3  ;;  %v2160_v61 = vld [vmem:[%s2033_s29 + $0x70] sm:$0xff] }
  0x21   : > { %935 = vmatpush.bf16.msra.mxu0 %v1742_v28 }
  0x25   : > { %936 = vmatpush.bf16.msra.mxu0 %v1741_v29 }
  0x27   : > { %429 = vperm.xlu2 %1817, %v385_v6  }
  0x28   : > { %748 = vperm.xlu1 %1816, %v400_v4   ;;  %444 = vperm.xlu0 %1815, %v388_v7  }
  0x29   : > { %937 = vmatpush.bf16.msra.mxu0 %v1740_v31 }
  0x2d   : > { %938 = vmatpush.bf16.msra.mxu0 %v1739_v35  ;;  %v412_v35 = vld [vmem:[%s2033_s29 + $0x68] sm:$0xff] }
  0x2f   : > { %1819 = vset.pattern.permute.xlu2 %v1918_v0 }
  0x30   : > { %1818 = vset.pattern.permute.xlu1 %v1919_v1  ;;  %464 = vperm.xlu0 %1815, %v2047_v8  }
  0x31   : > { %542 = vperm.xlu2 %1819, %v385_v6   ;;  %434 = vperm.xlu1 %1818, %v386_v9  }
  0x32   : > { %939 = vmatpush.bf16.msra.mxu0 %v1738_v38 }
  0x38   : > { %1830 = vset.pattern.permute.xlu0 %v1918_v0 }
  0x39   : > { %1820 = vset.pattern.permute.xlu2 %v1919_v1  ;;  %642 = vperm.xlu1 %1818, %v401_v10  }
  0x3a   : > { %744 = vperm.xlu0 %1830, %v399_v2   ;;  %647 = vperm.xlu2 %1820, %v402_v11  }
  0x41   : > { %1821 = vset.pattern.permute.xlu1 %v1918_v0 }
  0x42   : > { %546 = vperm.xlu0 %1830, %v386_v9   ;;  %439 = vperm.xlu2 %1820, %v387_v12  }
  0x43   : > { %756 = vperm.xlu1 %1821, %v402_v11  }
  0x4a   : > { %752 = vperm.xlu0 %1830, %v401_v10   ;;  %1822 = vset.pattern.permute.xlu2 %v1918_v0 }
  0x4b   : > { %550 = vperm.xlu1 %1821, %v387_v12   ;;  %554 = vperm.xlu2 %1822, %v388_v7   ;;  %v395_v7 = vld [vmem:[%s2038_s12 + $0x60] sm:$0xff] }
  0x52   : > { %760 = vperm.xlu0 %1830, %v403_v13  }
  0x53   : > { %1823 = vset.pattern.permute.xlu1 %v1919_v1  ;;  %1824 = vset.pattern.permute.xlu2 %v1919_v1 }
  0x54   : > { %652 = vperm.xlu1 %1823, %v403_v13   ;;  %657 = vperm.xlu2 %1824, %v404_v14  }
  0x5a   : > { %562 = vperm.xlu0 %1830, %v390_v15  }
  0x5c   : > { %1825 = vset.pattern.permute.xlu1 %v1918_v0  ;;  %449 = vperm.xlu2 %1824, %v389_v16  }
  0x5d   : > { %764 = vperm.xlu1 %1825, %v404_v14  }
  0x62   : > { %768 = vperm.xlu0 %1830, %v405_v17  }
  0x64   : > { %1827 = vset.pattern.permute.xlu2 %v1918_v0 }
  0x65   : > { %1826 = vset.pattern.permute.xlu1 %v1919_v1  ;;  %558 = vperm.xlu2 %1827, %v389_v16  }
  0x66   : > { %454 = vperm.xlu1 %1826, %v390_v15  }
  0x6a   : > { %776 = vperm.xlu0 %1830, %v407_v18  }
  0x6d   : > { %1828 = vset.pattern.permute.xlu2 %v1919_v1 }
  0x6e   : > { %662 = vperm.xlu1 %1826, %v405_v17   ;;  %667 = vperm.xlu2 %1828, %v406_v19  }
  0x71   : > { %v2078_v23 = vpop.permute.xlu2 %632 }
  0x72   : > { %578 = vperm.xlu0 %1830, %v394_v20   ;;  %v711_v3 = vmul.f32 %v2153_v57, %v2078_v23 }
  0x76   : > { %1829 = vset.pattern.permute.xlu1 %v1918_v0  ;;  %459 = vperm.xlu2 %1828, %v391_v21  }
  0x77   : > { %772 = vperm.xlu1 %1829, %v406_v19  }
  0x79   : > { %v2089_v27 = vpop.permute.xlu2 %637 }
  0x7a   : > { %784 = vperm.xlu0 %1830, %v409_v24   ;;  %v712_v4 = vmul.f32 %v2153_v57, %v2089_v27 }
  0x7e   : > { %1831 = vset.pattern.permute.xlu2 %v1918_v0 }
  0x7f   : > { %566 = vperm.xlu1 %1829, %v391_v21   ;;  %570 = vperm.xlu2 %1831, %v2047_v8  }
  0x81   : > { %v2105_v32 = vpop.permute.xlu2 %429 }
  0x82   : > { %1839 = vset.pattern.permute.xlu0 %v1919_v1  ;;  %v500_v19 = vmul.f32 %v2133_v46, %v2105_v32 }
  0x83   : > { %484 = vperm.xlu0 %1839, %v2111_v36  }
  0x84   : > { %v519_v25 = vadd.f32 %v2143_v50, %v500_v19 }
  0x87   : > { %1832 = vset.pattern.permute.xlu1 %v1919_v1  ;;  %1833 = vset.pattern.permute.xlu2 %v1919_v1 }
  0x88   : > { %672 = vperm.xlu1 %1832, %v407_v18   ;;  %677 = vperm.xlu2 %1833, %v408_v30  }
  0x8a   : > { %v535_v33 = vpop.permute.xlu1 %534  ;;  %v420_v34 = vpop.permute.xlu0 %419 }
  0x8b   : > { %v2119_v40 = vpop.permute.xlu2 %542  ;;  %1843 = vset.pattern.permute.xlu0 %v1918_v0  ;;  %v498_v51 = vmul.f32 %v2133_v46, %v420_v34  ;;  %v598_v62 = vmul.f32 %v2148_v53, %v535_v33 }
  0x8c   : > { %792 = vperm.xlu0 %1843, %v2123_v42   ;;  %v600_v26 = vmul.f32 %v2148_v53, %v2119_v40 }
  0x8d   : > { %v517_v58 = vadd.f32 %v2143_v50, %v498_v51 }
  0x8e   : > { %v616_v31 = vadd.f32 %v600_v26, %v519_v25 }
  0x8f   : > { %v614_v5 = vadd.f32 %v598_v62, %v517_v58 }
  0x90   : > { %1834 = vset.pattern.permute.xlu1 %v1918_v0  ;;  %469 = vperm.xlu2 %1833, %v393_v37  }
  0x91   : > { %780 = vperm.xlu1 %1834, %v408_v30   ;;  %v727_v12 = vadd.f32 %v711_v3, %v614_v5 }
  0x92   : > { %v539_v39 = vpop.permute.xlu1 %538  ;;  %v425_v41 = vpop.permute.xlu0 %424 }
  0x93   : > { %v499_v49 = vmul.f32 %v2133_v46, %v425_v41  ;;  %v599_v59 = vmul.f32 %v2148_v53, %v539_v39 }
  0x94   : > { %v648_v47 = vpop.permute.xlu2 %647  ;;  %594 = vperm.xlu0 %1843, %v2136_v48  }
  0x95   : > { %v518_v54 = vadd.f32 %v2143_v50, %v499_v49  ;;  %v714_v27 = vmul.f32 %v2153_v57, %v648_v47  ;;  %v397_v47 = vld [vmem:[%s2038_s12 + $0x70] sm:$0xff] }
  0x97   : > { %v615_v63 = vadd.f32 %v599_v59, %v518_v54 }
  0x98   : > { %1836 = vset.pattern.permute.xlu2 %v1918_v0 }
  0x99   : > { %1835 = vset.pattern.permute.xlu1 %v1919_v1  ;;  %574 = vperm.xlu2 %1836, %v393_v37   ;;  %v728_v8 = vadd.f32 %v712_v4, %v615_v63 }
  0x9a   : > { %474 = vperm.xlu1 %1835, %v394_v20   ;;  %v749_v44 = vpop.permute.xlu1 %748  ;;  %v2131_v45 = vpop.permute.xlu0 %444 }
  0x9b   : > { %v809_v6 = vmul.f32 %v2157_v60, %v749_v44  ;;  %v503_v49 = vmul.f32 %v2133_v46, %v2131_v45 }
  0x9c   : > { %v440_v2 = vpop.permute.xlu2 %439  ;;  %800 = vperm.xlu0 %1843, %v2160_v61  }
  0x9d   : > { %v825_v11 = vadd.f32 %v809_v6, %v728_v8 }
  0x9f   : > { %v841_v15 = vmax.f32 %v825_v11, 0.0 }
  0xa1   : > { %1837 = vset.pattern.permute.xlu2 %v1919_v1 }
  0xa2   : > { %682 = vperm.xlu1 %1835, %v409_v24   ;;  %v2151_v55 = vpop.permute.xlu0 %464  ;;  %687 = vperm.xlu2 %1837, %v410_v52  }
  0xa3   : > { %v435_v56 = vpop.permute.xlu1 %434 }
  0xa4   : > { %v501_v16 = vmul.f32 %v2133_v46, %v435_v56  ;;  %v522_v56 = vadd.f32 %v2143_v50, %v503_v49 }
  0xa5   : > { %v555_v17 = vpop.permute.xlu2 %554 }
  0xa6   : > { %v520_v22 = vadd.f32 %v2143_v50, %v501_v16  ;;  %v603_v59 = vmul.f32 %v2148_v53, %v555_v17 }
  0xaa   : > { %1838 = vset.pattern.permute.xlu1 %v1918_v0  ;;  %479 = vperm.xlu2 %1837, %v395_v7  }
  0xab   : > { %788 = vperm.xlu1 %1838, %v410_v52   ;;  %v643_v9 = vpop.permute.xlu1 %642 }
  0xac   : > { %v745_v10 = vpop.permute.xlu0 %744  ;;  %v713_v29 = vmul.f32 %v2153_v57, %v643_v9 }
  0xad   : > { %v808_v13 = vmul.f32 %v2157_v60, %v745_v10 }
  0xae   : > { %v658_v32 = vpop.permute.xlu2 %657 }
  0xaf   : > { %v824_v14 = vadd.f32 %v808_v13, %v727_v12  ;;  %v716_v3 = vmul.f32 %v2153_v57, %v658_v32 }
  0xb1   : > { %v840_v18 = vmax.f32 %v824_v14, 0.0 }
  0xb2   : > { %1840 = vset.pattern.permute.xlu2 %v1918_v0 }
  0xb3   : > { %582 = vperm.xlu1 %1838, %v395_v7   ;;  %v856_v20 = vpack.c.bf16 %v841_v15, %v840_v18  ;;  %586 = vperm.xlu2 %1840, %v2111_v36   ;;  %v729_v36 = vadd.f32 %v713_v29, %v616_v31  ;;  %v414_v15 = vld [vmem:[%s2033_s29 + $0x78] sm:$0xff]  ;;  %s367_s29 = sand.u32 1, %s1908_s14  }
  0xb4   : > { %v547_v21 = vpop.permute.xlu0 %546  ;;  %s1583_s26 = sshll.u32 %s367_s29, 7  ;;  %s1490_s17 = scalar_lea.sflag [#allocation3], %s367_s29 }
  0xb5   : > { %v601_v23 = vmul.f32 %v2148_v53, %v547_v21  ;;  %v757_v24 = vpop.permute.xlu1 %756  ;;  %940 = vmatmul.bf16.vlgmr.msra.gmra.mxu0 %v856_v20  ;;  %s2560_s27 = scalar_lea.vmem [#allocation2], %s1583_s26 }
  0xb6   : > { %v811_v33 = vmul.f32 %v2157_v60, %v757_v24  ;;  %v450_v51 = vpop.permute.xlu2 %449  ;;  %s1502_s18 = sshll.u32 %s2560_s27, 4  ;;  %s1503_s18 = int_to_ptr.vmem [resolvable:$true] %s1502_s18 }
  0xb7   : > { %v617_v28 = vadd.f32 %v601_v23, %v520_v22  ;;  %v504_v17 = vmul.f32 %v2133_v46, %v450_v51 }
  0xb9   : > { %v730_v30 = vadd.f32 %v714_v27, %v617_v28  ;;  %v523_v20 = vadd.f32 %v2143_v50, %v504_v17 }
  0xbb   : > { %1841 = vset.pattern.permute.xlu1 %v1919_v1  ;;  %1842 = vset.pattern.permute.xlu2 %v1919_v1  ;;  %v827_v37 = vadd.f32 %v811_v33, %v730_v30 }
  0xbc   : > { %692 = vperm.xlu1 %1841, %v2123_v42   ;;  %v753_v34 = vpop.permute.xlu0 %752  ;;  %697 = vperm.xlu2 %1842, %v412_v35   ;;  %v502_v42 = vmul.f32 %v2133_v46, %v440_v2  ;;  %v619_v2 = vadd.f32 %v603_v59, %v522_v56 }
  0xbd   : > { %v810_v38 = vmul.f32 %v2157_v60, %v753_v34  ;;  %v551_v39 = vpop.permute.xlu1 %550  ;;  %v843_v41 = vmax.f32 %v827_v37, 0.0 }
  0xbe   : > { %v602_v52 = vmul.f32 %v2148_v53, %v551_v39  ;;  %v521_v58 = vadd.f32 %v2143_v50, %v502_v42  ;;  %v732_v8 = vadd.f32 %v716_v3, %v619_v2 }
  0xbf   : > { %v826_v40 = vadd.f32 %v810_v38, %v729_v36  ;;  %v559_v6 = vpop.permute.xlu2 %558 }
  0xc0   : > { %v618_v45 = vadd.f32 %v602_v52, %v521_v58 }
  0xc1   : > { %v842_v43 = vmax.f32 %v826_v40, 0.0 }
  0xc3   : > { %v857_v44 = vpack.c.bf16 %v843_v41, %v842_v43 }
  0xc4   : > { %1844 = vset.pattern.permute.xlu1 %v1918_v0  ;;  %489 = vperm.xlu2 %1842, %v397_v47   ;;  %v761_v63 = vpop.permute.xlu0 %760 }
  0xc5   : > { %796 = vperm.xlu1 %1844, %v412_v35   ;;  %945 = vmatmul.bf16.gmra.mxu0 %v857_v44  ;;  %v812_v4 = vmul.f32 %v2157_v60, %v761_v63 }
  0xc6   : > { %v653_v54 = vpop.permute.xlu1 %652 }
  0xc7   : > { %v715_v62 = vmul.f32 %v2153_v57, %v653_v54 }
  0xc9   : > { %v731_v5 = vadd.f32 %v715_v62, %v618_v45 }
  0xcb   : > { %v828_v10 = vadd.f32 %v812_v4, %v731_v5 }
  0xcc   : > { %1846 = vset.pattern.permute.xlu2 %v1918_v0  ;;  %v563_v18 = vpop.permute.xlu0 %562 }
  0xcd   : > { %1845 = vset.pattern.permute.xlu1 %v1919_v1  ;;  %590 = vperm.xlu2 %1846, %v397_v47   ;;  %v844_v13 = vmax.f32 %v828_v10, 0.0  ;;  %v605_v22 = vmul.f32 %v2148_v53, %v563_v18  ;;  %v507_v47 = vmul.f32 %v2133_v46, %v2151_v55 }
  0xce   : > { %494 = vperm.xlu1 %1845, %v2136_v48   ;;  %v668_v48 = vpop.permute.xlu2 %667 }
  0xcf   : > { %v765_v7 = vpop.permute.xlu1 %764  ;;  %v718_v26 = vmul.f32 %v2153_v57, %v668_v48  ;;  %v526_v58 = vadd.f32 %v2143_v50, %v507_v47 }
  0xd0   : > { %v813_v9 = vmul.f32 %v2157_v60, %v765_v7 }
  0xd2   : > { %v829_v11 = vadd.f32 %v813_v9, %v732_v8 }
  0xd4   : > { %v845_v12 = vmax.f32 %v829_v11, 0.0  ;;  %v769_v29 = vpop.permute.xlu0 %768 }
  0xd5   : > { %1847 = vset.pattern.permute.xlu2 %v1919_v1 }
  0xd6   : > { %702 = vperm.xlu1 %1845, %v2160_v61   ;;  %v858_v14 = vpack.c.bf16 %v845_v12, %v844_v13  ;;  %707 = vperm.xlu2 %1847, %v414_v15   ;;  %v604_v61 = vmul.f32 %v2148_v53, %v559_v6  ;;  %v460_v24 = vpop.permute.xlu2 %459 }
  0xd7   : > { %v506_v41 = vmul.f32 %v2133_v46, %v460_v24 }
  0xd8   : > { %v455_v16 = vpop.permute.xlu1 %454  ;;  %950 = vmatmul.bf16.gmra.mxu0 %v858_v14  ;;  %v620_v25 = vadd.f32 %v604_v61, %v523_v20 }
  0xd9   : > { %v505_v19 = vmul.f32 %v2133_v46, %v455_v16  ;;  %v525_v49 = vadd.f32 %v2143_v50, %v506_v41 }
  0xdb   : > { %v524_v1 = vadd.f32 %v2143_v50, %v505_v19 }
  0xdc   : > { %v777_v54 = vpop.permute.xlu0 %776 }
  0xdd   : > { %v621_v27 = vadd.f32 %v605_v22, %v524_v1  ;;  %v816_v63 = vmul.f32 %v2157_v60, %v777_v54 }
  0xde   : > { %1848 = vset.pattern.permute.xlu1 %v1918_v0  ;;  %v814_v0 = vmul.f32 %v2157_v60, %v769_v29  ;;  %v571_v35 = vpop.permute.xlu2 %570 }
  0xdf   : > { %804 = vperm.xlu1 %1848, %v414_v15   ;;  %v734_v31 = vadd.f32 %v718_v26, %v621_v27  ;;  %v607_v51 = vmul.f32 %v2148_v53, %v571_v35 }
  0xe0   : > { %v663_v21 = vpop.permute.xlu1 %662 }
  0xe1   : > { %v717_v23 = vmul.f32 %v2153_v57, %v663_v21  ;;  %v623_v45 = vadd.f32 %v607_v51, %v526_v58 }
  0xe3   : > { %v733_v28 = vadd.f32 %v717_v23, %v620_v25 }
  0xe4   : > { %v579_v11 = vpop.permute.xlu0 %578 }
  0xe5   : > { %v830_v33 = vadd.f32 %v814_v0, %v733_v28  ;;  %v609_v19 = vmul.f32 %v2148_v53, %v579_v11 }
  0xe6   : > { %v678_v40 = vpop.permute.xlu2 %677 }
  0xe7   : > { %v846_v37 = vmax.f32 %v830_v33, 0.0  ;;  %v720_v59 = vmul.f32 %v2153_v57, %v678_v40  ;;  %v2247_v40 = vld [vmem:[%s2679_s5] ss:$0 sm:$0xff] }
  0xe9   : > { %v773_v30 = vpop.permute.xlu1 %772  ;;  %v736_v3 = vadd.f32 %v720_v59, %v623_v45 }
  0xea   : > { %v815_v32 = vmul.f32 %v2157_v60, %v773_v30 }
  0xec   : > { %v831_v34 = vadd.f32 %v815_v32, %v734_v31  ;;  %v785_v61 = vpop.permute.xlu0 %784 }
  0xed   : > { %v818_v24 = vmul.f32 %v2157_v60, %v785_v61 }
  0xee   : > { %v847_v36 = vmax.f32 %v831_v34, 0.0  ;;  %v470_v56 = vpop.permute.xlu2 %469 }
  0xef   : > { %v508_v12 = vmul.f32 %v2133_v46, %v470_v56 }
  0xf0   : > { %v859_v38 = vpack.c.bf16 %v847_v36, %v846_v37 }
  0xf1   : > { %v567_v39 = vpop.permute.xlu1 %566  ;;  %v527_v15 = vadd.f32 %v2143_v50, %v508_v12 }
  0xf2   : > { %955 = vmatmul.bf16.gmra.mxu0 %v859_v38  ;;  %v606_v43 = vmul.f32 %v2148_v53, %v567_v39 }
  0xf4   : > { %v622_v52 = vadd.f32 %v606_v43, %v525_v49 }
  0xf5   : > { %v485_v34 = vpop.permute.xlu0 %484 }
  0xf6   : > { %v575_v8 = vpop.permute.xlu2 %574  ;;  %v511_v36 = vmul.f32 %v2133_v46, %v485_v34 }
  0xf7   : > { %v608_v16 = vmul.f32 %v2148_v53, %v575_v8 }
  0xf9   : > { %v624_v20 = vadd.f32 %v608_v16, %v527_v15 }
  0xfa   : > { %v673_v44 = vpop.permute.xlu1 %672 }
  0xfb   : > { %v719_v42 = vmul.f32 %v2153_v57, %v673_v44  ;;  %v530_v44 = vadd.f32 %v2143_v50, %v511_v36 }
  0xfd   : > { %v735_v62 = vadd.f32 %v719_v42, %v622_v52 }
  0xfe   : > { %v688_v13 = vpop.permute.xlu2 %687  ;;  %v793_v51 = vpop.permute.xlu0 %792 }
  0xff   : > { %v832_v4 = vadd.f32 %v816_v63, %v735_v62  ;;  %v722_v22 = vmul.f32 %v2153_v57, %v688_v13  ;;  %v820_v58 = vmul.f32 %v2157_v60, %v793_v51 }
 0x101   : > { %v848_v7 = vmax.f32 %v832_v4, 0.0 }
 0x103   : > { %v781_v2 = vpop.permute.xlu1 %780 }
 0x104   : > { %v817_v55 = vmul.f32 %v2157_v60, %v781_v2 }
 0x106   : > { %v833_v5 = vadd.f32 %v817_v55, %v736_v3  ;;  %v480_v23 = vpop.permute.xlu2 %479  ;;  %v595_v13 = vpop.permute.xlu0 %594 }
 0x107   : > { %v510_v35 = vmul.f32 %v2133_v46, %v480_v23 }
 0x108   : > { %v849_v6 = vmax.f32 %v833_v5, 0.0 }
 0x109   : > { %v529_v41 = vadd.f32 %v2143_v50, %v510_v35 }
 0x10a   : > { %v860_v9 = vpack.c.bf16 %v849_v6, %v848_v7 }
 0x10c   : > { %v475_v10 = vpop.permute.xlu1 %474  ;;  %960 = vmatmul.bf16.gmra.mxu0 %v860_v9 }
 0x10d   : > { %v509_v14 = vmul.f32 %v2133_v46, %v475_v10 }
 0x10e   : > { %v587_v32 = vpop.permute.xlu2 %586 }
 0x10f   : > { %v528_v17 = vadd.f32 %v2143_v50, %v509_v14  ;;  %v611_v43 = vmul.f32 %v2148_v53, %v587_v32 }
 0x111   : > { %v625_v21 = vadd.f32 %v609_v19, %v528_v17  ;;  %v627_v54 = vadd.f32 %v611_v43, %v530_v44 }
 0x113   : > { %v738_v26 = vadd.f32 %v722_v22, %v625_v21 }
 0x114   : > { %v683_v48 = vpop.permute.xlu1 %682 }
 0x115   : > { %v721_v18 = vmul.f32 %v2153_v57, %v683_v48 }
 0x116   : > { %v698_v39 = vpop.permute.xlu2 %697 }
 0x117   : > { %v737_v1 = vadd.f32 %v721_v18, %v624_v20  ;;  %v724_v56 = vmul.f32 %v2153_v57, %v698_v39 }
 0x119   : > { %v834_v28 = vadd.f32 %v818_v24, %v737_v1  ;;  %v740_v63 = vadd.f32 %v724_v56, %v627_v54  ;;  %v1751_v56 = vld [vmem:[%s2680_s6 + $0x28] sm:$0xff] }
 0x11b   : > { %v850_v30 = vmax.f32 %v834_v28, 0.0 }
 0x11d   : > { %v789_v25 = vpop.permute.xlu1 %788 }
 0x11e   : > { %v819_v27 = vmul.f32 %v2157_v60, %v789_v25  ;;  %v490_v55 = vpop.permute.xlu2 %489  ;;  %v801_v25 = vpop.permute.xlu0 %800 }
 0x11f   : > { %v512_v16 = vmul.f32 %v2133_v46, %v490_v55  ;;  %v1747_v55 = vld [vmem:[%s2680_s6 + $0x8] sm:$0xff] }
 0x120   : > { %v835_v29 = vadd.f32 %v819_v27, %v738_v26 }
 0x121   : > { %v531_v18 = vadd.f32 %v2143_v50, %v512_v16 }
 0x122   : > { %v851_v0 = vmax.f32 %v835_v29, 0.0 }
 0x124   : > { %v861_v31 = vpack.c.bf16 %v851_v0, %v850_v30 }
 0x125   : > { %v583_v33 = vpop.permute.xlu1 %582 }
 0x126   : > { %965 = vmatmul.bf16.gmra.mxu0 %v861_v31  ;;  %v610_v37 = vmul.f32 %v2148_v53, %v583_v33 }
 0x127   : > { %v591_v14 = vpop.permute.xlu2 %590 }
 0x128   : > { %v626_v49 = vadd.f32 %v610_v37, %v529_v41  ;;  %v612_v19 = vmul.f32 %v2148_v53, %v591_v14 }
 0x12a   : > { %v628_v24 = vadd.f32 %v612_v19, %v531_v18 }
 0x12e   : > { %v693_v38 = vpop.permute.xlu1 %692 }
 0x12f   : > { %v723_v47 = vmul.f32 %v2153_v57, %v693_v38 }
 0x130   : > { %v708_v1 = vpop.permute.xlu2 %707 }
 0x131   : > { %v739_v59 = vadd.f32 %v723_v47, %v626_v49  ;;  %v726_v28 = vmul.f32 %v2153_v57, %v708_v1  ;;  %v1753_v47 = vld [vmem:[%s2680_s6 + $0x38] sm:$0xff] }
 0x132   : > { %v941_v42 = vpop.f32.mrf.mxu0  ;;  %1121 = vmatpush.bf16.msra.mxu1 %v1753_v47  ;;  %v1757_v47 = vld [vmem:[%s2680_s6 + $0x58] sm:$0xff] }
 0x133   : > { %v2254_v52 = vadd.f32 %v2247_v40, %v941_v42  ;;  %v836_v3 = vadd.f32 %v820_v58, %v739_v59  ;;  %v1752_v42 = vld [vmem:[%s2680_s6 + $0x30] sm:$0xff]  ;;  %v1750_v58 = vld [vmem:[%s2680_s6 + $0x20] sm:$0xff]  ;;  %v1749_v59 = vld [vmem:[%s2680_s6 + $0x18] sm:$0xff] }
 0x135   : > { %v981_v62 = vmax.f32 %v2254_v52, 0.0  ;;  %v852_v8 = vmax.f32 %v836_v3, 0.0 }
 0x136   : > { %1122 = vmatpush.bf16.msra.mxu1 %v1752_v42  ;;  %v1755_v42 = vld [vmem:[%s2680_s6 + $0x48] sm:$0xff] }
 0x137   : > { %v797_v45 = vpop.permute.xlu1 %796  ;;  %997 = vrot.lane.b32.xlu2 %v981_v62, %s1920_s21 }
 0x138   : > { %v821_v2 = vmul.f32 %v2157_v60, %v797_v45 }
 0x13a   : > { %v837_v4 = vadd.f32 %v821_v2, %v740_v63  ;;  %v943_v5 = vpop.f32.mrf.mxu0  ;;  %1123 = vmatpush.bf16.msra.mxu1 %v1751_v56  ;;  %v1748_v63 = vld [vmem:[%s2680_s6 + $0x10] sm:$0xff] }
 0x13b   : > { %v2264_v6 = vadd.f32 %v2247_v40, %v943_v5  ;;  %v1746_v5 = vld [vmem:[%s2680_s6] sm:$0xff] }
 0x13c   : > { %v853_v7 = vmax.f32 %v837_v4, 0.0 }
 0x13d   : > { %v982_v9 = vmax.f32 %v2264_v6, 0.0 }
 0x13e   : > { %v862_v10 = vpack.c.bf16 %v853_v7, %v852_v8  ;;  %1124 = vmatpush.bf16.msra.mxu1 %v1750_v58 }
 0x13f   : > { %999 = vrot.lane.b32.xlu0 %v982_v9, %s1920_s21 }
 0x140   : > { %v495_v11 = vpop.permute.xlu1 %494  ;;  %970 = vmatmul.bf16.gmra.mxu0 %v862_v10 }
 0x141   : > { %v513_v17 = vmul.f32 %v2133_v46, %v495_v11  ;;  %v613_v46 = vmul.f32 %v2148_v53, %v595_v13 }
 0x142   : > { %v946_v12 = vpop.f32.mrf.mxu0  ;;  %1125 = vmatpush.bf16.msra.mxu1 %v1749_v59 }
 0x143   : > { %v2271_v15 = vadd.f32 %v2247_v40, %v946_v12  ;;  %v532_v61 = vadd.f32 %v2143_v50, %v513_v17  ;;  %v822_v50 = vmul.f32 %v2157_v60, %v801_v25 }
 0x145   : > { %v983_v48 = vmax.f32 %v2271_v15, 0.0  ;;  %v629_v27 = vadd.f32 %v613_v46, %v532_v61 }
 0x146   : > { %1126 = vmatpush.bf16.msra.mxu1 %v1748_v63 }
 0x147   : > { %1001 = vrot.lane.b32.xlu1 %v983_v48, %s1920_s21  ;;  %v742_v30 = vadd.f32 %v726_v28, %v629_v27 }
 0x148   : > { %v703_v20 = vpop.permute.xlu1 %702 }
 0x149   : > { %v725_v21 = vmul.f32 %v2153_v57, %v703_v20 }
 0x14a   : > { %v948_v22 = vpop.f32.mrf.mxu0  ;;  %1127 = vmatpush.bf16.msra.mxu1 %v1747_v55 }
 0x14b   : > { %v2284_v23 = vadd.f32 %v2247_v40, %v948_v22  ;;  %v741_v29 = vadd.f32 %v725_v21, %v628_v24 }
 0x14d   : > { %v984_v26 = vmax.f32 %v2284_v23, 0.0  ;;  %v838_v32 = vadd.f32 %v822_v50, %v741_v29 }
 0x14e   : > { %1128 = vmatpush.bf16.msra.mxu1 %v1746_v5 }
 0x14f   : > { %1003 = vrot.lane.b32.xlu2 %v984_v26, %s1920_s21  ;;  %v854_v36 = vmax.f32 %v838_v32, 0.0 }
 0x151   : > { %v805_v0 = vpop.permute.xlu1 %804 }
 0x152   : > { %v823_v31 = vmul.f32 %v2157_v60, %v805_v0 }
 0x154   : > { %v839_v53 = vadd.f32 %v823_v31, %v742_v30 }
 0x155   : > { %v951_v33 = vpop.f32.mrf.mxu0 }
 0x156   : > { %v855_v34 = vmax.f32 %v839_v53, 0.0  ;;  %v2295_v35 = vadd.f32 %v2247_v40, %v951_v33 }
 0x158   : > { %v985_v57 = vmax.f32 %v2295_v35, 0.0  ;;  %v863_v37 = vpack.c.bf16 %v855_v34, %v854_v36 }
 0x15a   : > { %1005 = vrot.lane.b32.xlu0 %v985_v57, %s1920_s21  ;;  %975 = vmatmul.bf16.gmra.mxu0 %v863_v37 }
 0x15d   : > { %v953_v38 = vpop.f32.mrf.mxu0 }
 0x15e   : > { %v2302_v39 = vadd.f32 %v2247_v40, %v953_v38 }
 0x160   : > { %v986_v60 = vmax.f32 %v2302_v39, 0.0  ;;  %v1761_v39 = vld [vmem:[%s2680_s6 + $0x78] sm:$0xff] }
 0x161   : > { %1264 = vmatpush.bf16.msra.mxu2 %v1761_v39 }
 0x162   : > { %1007 = vrot.lane.b32.xlu1 %v986_v60, %s1920_s21 }
 0x16f   : > { %v956_v41 = vpop.f32.mrf.mxu0 }
 0x170   : > { %v2309_v43 = vadd.f32 %v2247_v40, %v956_v41  ;;  %v1760_v41 = vld [vmem:[%s2680_s6 + $0x70] sm:$0xff] }
 0x171   : > { %1265 = vmatpush.bf16.msra.mxu2 %v1760_v41 }
 0x172   : > { %v987_v44 = vmax.f32 %v2309_v43, 0.0  ;;  %v1759_v43 = vld [vmem:[%s2680_s6 + $0x68] sm:$0xff] }
 0x174   : > { %1009 = vrot.lane.b32.xlu2 %v987_v44, %s1920_s21 }
 0x175   : > { %1266 = vmatpush.bf16.msra.mxu2 %v1759_v43 }
 0x177   : > { %v958_v49 = vpop.f32.mrf.mxu0 }
 0x178   : > { %v2322_v51 = vadd.f32 %v2247_v40, %v958_v49  ;;  %v1756_v49 = vld [vmem:[%s2680_s6 + $0x50] sm:$0xff] }
 0x17a   : > { %v988_v54 = vmax.f32 %v2322_v51, 0.0  ;;  %v1754_v51 = vld [vmem:[%s2680_s6 + $0x40] sm:$0xff] }
 0x17c   : > { %1011 = vrot.lane.b32.xlu0 %v988_v54, %s1920_s21 }
 0x189   : > { %v961_v45 = vpop.f32.mrf.mxu0 }
 0x18a   : > { %v2341_v2 = vadd.f32 %v2247_v40, %v961_v45 }
 0x18c   : > { %v989_v3 = vmax.f32 %v2341_v2, 0.0  ;;  %v2468_v2 = vld [vmem:[%s2681_s7] ss:$0 sm:$0xff] }
 0x18e   : > { %1013 = vrot.lane.b32.xlu1 %v989_v3, %s1920_s21 }
 0x191   : > { %v963_v4 = vpop.f32.mrf.mxu0  ;;  %v998_v17 = vpop.permute.xlu2 %997 }
 0x192   : > { %v964_v7 = vadd.f32 %v2247_v40, %v963_v4  ;;  %v2369_v19 = vmul.f32 %v998_v17, %v981_v62 }
 0x194   : > { %v990_v8 = vmax.f32 %v964_v7, 0.0 }
 0x196   : > { %1015 = vrot.lane.b32.xlu2 %v990_v8, %s1920_s21 }
 0x1a3   : > { %v966_v10 = vpop.f32.mrf.mxu0 }
 0x1a4   : > { %v2354_v11 = vadd.f32 %v2247_v40, %v966_v10 }
 0x1a6   : > { %v991_v12 = vmax.f32 %v2354_v11, 0.0 }
 0x1a8   : > { %1017 = vrot.lane.b32.xlu0 %v991_v12, %s1920_s21 }
 0x1a9   : > { %v1004_v46 = vpop.permute.xlu2 %1003 }
 0x1aa   : > { %v2387_v62 = vmul.f32 %v1004_v46, %v984_v26 }
 0x1ab   : > { %v968_v13 = vpop.f32.mrf.mxu0 }
 0x1ac   : > { %v2361_v14 = vadd.f32 %v2247_v40, %v968_v13 }
 0x1ae   : > { %v992_v16 = vmax.f32 %v2361_v14, 0.0 }
 0x1b0   : > { %1019 = vrot.lane.b32.xlu1 %v992_v16, %s1920_s21 }
 0x1b1   : > { %v1000_v18 = vpop.permute.xlu0 %999 }
 0x1b2   : > { %v2373_v20 = vmul.f32 %v1000_v18, %v982_v9 }
 0x1b4   : > { %v1045_v61 = vpack.c.bf16 %v2373_v20, %v2369_v19 }
 0x1b6   : > { %1129 = vmatmul.bf16.vlgmr.msra.gmra.mxu1 %v1045_v61 }
 0x1b9   : > { %v1002_v21 = vpop.permute.xlu1 %1001 }
 0x1ba   : > { %v2382_v24 = vmul.f32 %v1002_v21, %v983_v48 }
 0x1bc   : > { %v1046_v6 = vpack.c.bf16 %v2387_v62, %v2382_v24 }
 0x1bd   : > { %v971_v22 = vpop.f32.mrf.mxu0 }
 0x1be   : > { %v2378_v1 = vadd.f32 %v2247_v40, %v971_v22 }
 0x1c0   : > { %v993_v52 = vmax.f32 %v2378_v1, 0.0 }
 0x1c2   : > { %1021 = vrot.lane.b32.xlu2 %v993_v52, %s1920_s21 }
 0x1c5   : > { %v973_v9 = vpop.f32.mrf.mxu0 }
 0x1c6   : > { %v974_v25 = vadd.f32 %v2247_v40, %v973_v9  ;;  %1134 = vmatmul.bf16.gmra.mxu1 %v1046_v6 }
 0x1c8   : > { %v994_v15 = vmax.f32 %v974_v25, 0.0 }
 0x1ca   : > { %1023 = vrot.lane.b32.xlu0 %v994_v15, %s1920_s21 }
 0x1cc   : > { %v1006_v48 = vpop.permute.xlu0 %1005 }
 0x1cd   : > { %v2398_v23 = vmul.f32 %v1006_v48, %v985_v57 }
 0x1ce   : > { %v1010_v53 = vpop.permute.xlu2 %1009 }
 0x1cf   : > { %v2417_v34 = vmul.f32 %v1010_v53, %v987_v44  ;;  %v1758_v44 = vld [vmem:[%s2680_s6 + $0x60] sm:$0xff] }
 0x1d0   : > { %1267 = vmatpush.bf16.msra.mxu2 %v1758_v44 }
 0x1d4   : > { %v1008_v27 = vpop.permute.xlu1 %1007  ;;  %1268 = vmatpush.bf16.msra.mxu2 %v1757_v47 }
 0x1d5   : > { %v2402_v26 = vmul.f32 %v1008_v27, %v986_v60 }
 0x1d7   : > { %v976_v28 = vpop.f32.mrf.mxu0  ;;  %v1047_v29 = vpack.c.bf16 %v2402_v26, %v2398_v23 }
 0x1d8   : > { %v2407_v50 = vadd.f32 %v2247_v40, %v976_v28  ;;  %1269 = vmatpush.bf16.msra.mxu2 %v1756_v49  ;;  %v1769_v49 = vld [vmem:[%s2682_s8 + $0x38] sm:$0xff] }
 0x1d9   : > { %1139 = vmatmul.bf16.gmra.mxu1 %v1047_v29  ;;  %1405 = vmatpush.bf16.msra.mxu3 %v1769_v49 }
 0x1da   : > { %v995_v0 = vmax.f32 %v2407_v50, 0.0 }
 0x1dc   : > { %1025 = vrot.lane.b32.xlu1 %v995_v0, %s1920_s21  ;;  %1270 = vmatpush.bf16.msra.mxu2 %v1755_v42  ;;  %v1768_v42 = vld [vmem:[%s2682_s8 + $0x30] sm:$0xff] }
 0x1dd   : > { %1406 = vmatpush.bf16.msra.mxu3 %v1768_v42 }
 0x1df   : > { %v978_v30 = vpop.f32.mrf.mxu0 }
 0x1e0   : > { %v979_v31 = vadd.f32 %v2247_v40, %v978_v30  ;;  %1271 = vmatpush.bf16.msra.mxu2 %v1754_v51  ;;  %v1767_v51 = vld [vmem:[%s2682_s8 + $0x28] sm:$0xff] }
 0x1e1   : > { %1407 = vmatpush.bf16.msra.mxu3 %v1767_v51 }
 0x1e2   : > { %v996_v32 = vmax.f32 %v979_v31, 0.0 }
 0x1e4   : > { %1027 = vrot.lane.b32.xlu2 %v996_v32, %s1920_s21  ;;  %s1501_s21 = scalar_lea.hbm %s2684_s10, %s1770_s28 }
 0x1e5   : > { %s1504_s20 = sshll.u32 %s1501_s21, 4  ;;  %s1505_s20 = int_to_ptr.hbm [resolvable:$true] %s1504_s20 }
 0x1e6   : > { %s1868_s12 = sshra.s32 %s1505_s20, 4  ;;  %s1869_s12 = int_to_ptr.hbm [resolvable:$true] %s1868_s12 }
 0x1e7   : > { %s1870_s25 = scalar_lea.hbm %s1869_s12, 128  ;;  %p1875_p0 = scmp.lt.s32.totalorder %s1869_s12, %s2684_s10 }
 0x1e8   : > { %p1871_p11 = scmp.ne.s32.totalorder %s1869_s12, %s1870_s25  ;;  %p1876_p1 = scmp.lt.s32.totalorder %s1874_s30, %s1870_s25 }
 0x1ea   : > { %p1872_p12 = pnand %p1871_p11, %p2016_p5  ;;  %p1877_p2 = por %p1876_p1, %p1875_p0 }
 0x1ec   : > { %p1873_p13 = pneg %p1872_p12 }
 0x1ee   : > { %v1012_v33 = vpop.permute.xlu0 %1011  ;;  %p1878_p3 = pnand %p1877_p2, %p1873_p13 }
 0x1ef   : > { %v2421_v35 = vmul.f32 %v1012_v33, %v988_v54 }
 0x1f0   : > { %v1016_v57 = vpop.permute.xlu2 %1015 }
 0x1f1   : > { %v1048_v36 = vpack.c.bf16 %v2421_v35, %v2417_v34  ;;  %v2425_v40 = vmul.f32 %v1016_v57, %v990_v8 }
 0x1f3   : > { %1144 = vmatmul.bf16.gmra.mxu1 %v1048_v36 }
 0x200   : > { %v1014_v37 = vpop.permute.xlu1 %1013 }
 0x201   : > { %v2427_v38 = vmul.f32 %v1014_v37, %v989_v3 }
 0x203   : > { %v1049_v60 = vpack.c.bf16 %v2425_v40, %v2427_v38 }
 0x205   : > { %1149 = vmatmul.bf16.gmra.mxu1 %v1049_v60 }
 0x21a   : > { %v1018_v54 = vpop.permute.xlu0 %1017 }
 0x21b   : > { %v2457_v58 = vmul.f32 %v1018_v54, %v991_v12  ;;  %v1766_v54 = vld [vmem:[%s2682_s8 + $0x20] sm:$0xff] }
 0x21c   : > { %v1022_v3 = vpop.permute.xlu2 %1021  ;;  %1408 = vmatpush.bf16.msra.mxu3 %v1766_v54 }
 0x21d   : > { %v2474_v8 = vmul.f32 %v1022_v3, %v993_v52 }
 0x222   : > { %v1020_v56 = vpop.permute.xlu1 %1019 }
 0x223   : > { %v2461_v59 = vmul.f32 %v1020_v56, %v992_v16  ;;  %v1765_v56 = vld [vmem:[%s2682_s8 + $0x18] sm:$0xff] }
 0x224   : > { %1409 = vmatpush.bf16.msra.mxu3 %v1765_v56 }
 0x225   : > { %v1050_v45 = vpack.c.bf16 %v2461_v59, %v2457_v58 }
 0x227   : > { %1154 = vmatmul.bf16.gmra.mxu1 %v1050_v45 }
 0x233   : > { %v1130_v63 = vpop.f32.mrf.mxu1 }
 0x234   : > { %v1131_v55 = vadd.f32 %v2468_v2, %v1130_v63  ;;  %v1764_v63 = vld [vmem:[%s2682_s8 + $0x10] sm:$0xff] }
 0x235   : > { %1410 = vmatpush.bf16.msra.mxu3 %v1764_v63 }
 0x236   : > { %v1170_v11 = vmax.f32 %v1131_v55, 0.0  ;;  %v1763_v55 = vld [vmem:[%s2682_s8 + $0x8] sm:$0xff] }
 0x239   : > { %1411 = vmatpush.bf16.msra.mxu3 %v1763_v55 }
 0x23b   : > { %v1132_v4 = vpop.f32.mrf.mxu1 }
 0x23c   : > { %v1133_v5 = vadd.f32 %v2468_v2, %v1132_v4  ;;  %v1024_v7 = vpop.permute.xlu0 %1023 }
 0x23d   : > { %v2476_v10 = vmul.f32 %v1024_v7, %v994_v15 }
 0x23e   : > { %v1171_v12 = vmax.f32 %v1133_v5, 0.0  ;;  %v1028_v61 = vpop.permute.xlu2 %1027 }
 0x23f   : > { %v1051_v13 = vpack.c.bf16 %v2476_v10, %v2474_v8  ;;  %v2482_v52 = vmul.f32 %v1028_v61, %v996_v32 }
 0x240   : > { %v1186_v14 = vpack.c.bf16 %v1171_v12, %v1170_v11  ;;  %v1762_v12 = vld [vmem:[%s2682_s8] sm:$0xff] }
 0x241   : > { %1159 = vmatmul.bf16.gmra.mxu1 %v1051_v13  ;;  %1412 = vmatpush.bf16.msra.mxu3 %v1762_v12 }
 0x242   : > { %1272 = vmatmul.bf16.vlgmr.msra.gmra.mxu2 %v1186_v14 }
 0x243   : > { %v1135_v16 = vpop.f32.mrf.mxu1 }
 0x244   : > { %v1136_v17 = vadd.f32 %v2468_v2, %v1135_v16 }
 0x246   : > { %v1172_v22 = vmax.f32 %v1136_v17, 0.0 }
 0x24b   : > { %v1137_v18 = vpop.f32.mrf.mxu1 }
 0x24c   : > { %v1138_v21 = vadd.f32 %v2468_v2, %v1137_v18 }
 0x24e   : > { %v1173_v1 = vmax.f32 %v1138_v21, 0.0  ;;  %v1026_v46 = vpop.permute.xlu1 %1025  ;;  %v2527_v21 = vld [vmem:[%s2681_s7 + $0x1] ss:$0 sm:$0xff] }
 0x24f   : > { %v2486_v6 = vmul.f32 %v1026_v46, %v995_v0 }
 0x250   : > { %v1187_v9 = vpack.c.bf16 %v1173_v1, %v1172_v22 }
 0x251   : > { %v1052_v25 = vpack.c.bf16 %v2482_v52, %v2486_v6 }
 0x252   : > { %1277 = vmatmul.bf16.gmra.mxu2 %v1187_v9 }
 0x253   : > { %1164 = vmatmul.bf16.gmra.mxu1 %v1052_v25 }
 0x256   : > { %v1140_v15 = vpop.f32.mrf.mxu1 }
 0x257   : > { %v1141_v48 = vadd.f32 %v2468_v2, %v1140_v15 }
 0x259   : > { %v1174_v29 = vmax.f32 %v1141_v48, 0.0 }
 0x25e   : > { %v1142_v27 = vpop.f32.mrf.mxu1 }
 0x25f   : > { %v1143_v28 = vadd.f32 %v2468_v2, %v1142_v27 }
 0x261   : > { %v1175_v30 = vmax.f32 %v1143_v28, 0.0 }
 0x263   : > { %v1188_v31 = vpack.c.bf16 %v1175_v30, %v1174_v29 }
 0x265   : > { %1282 = vmatmul.bf16.gmra.mxu2 %v1188_v31 }
 0x270   : > { %v1145_v32 = vpop.f32.mrf.mxu1 }
 0x271   : > { %v1146_v50 = vadd.f32 %v2468_v2, %v1145_v32 }
 0x273   : > { %v1176_v33 = vmax.f32 %v1146_v50, 0.0 }
 0x278   : > { %v1147_v0 = vpop.f32.mrf.mxu1 }
 0x279   : > { %v1148_v53 = vadd.f32 %v2468_v2, %v1147_v0 }
 0x27b   : > { %v1177_v36 = vmax.f32 %v1148_v53, 0.0 }
 0x27d   : > { %v1189_v57 = vpack.c.bf16 %v1177_v36, %v1176_v33 }
 0x27f   : > { %1287 = vmatmul.bf16.gmra.mxu2 %v1189_v57 }
 0x282   : > { %v1150_v37 = vpop.f32.mrf.mxu1 }
 0x283   : > { %v1151_v39 = vadd.f32 %v2468_v2, %v1150_v37 }
 0x285   : > { %v1178_v43 = vmax.f32 %v1151_v39, 0.0 }
 0x28a   : > { %v1152_v60 = vpop.f32.mrf.mxu1 }
 0x28b   : > { %v1153_v41 = vadd.f32 %v2468_v2, %v1152_v60 }
 0x28d   : > { %v1179_v44 = vmax.f32 %v1153_v41, 0.0 }
 0x28f   : > { %v1190_v47 = vpack.c.bf16 %v1179_v44, %v1178_v43 }
 0x291   : > { %1292 = vmatmul.bf16.gmra.mxu2 %v1190_v47 }
 0x2a4   : > { %v1155_v45 = vpop.f32.mrf.mxu1 }
 0x2a5   : > { %v1156_v3 = vadd.f32 %v2468_v2, %v1155_v45 }
 0x2a7   : > { %v1180_v7 = vmax.f32 %v1156_v3, 0.0 }
 0x2ac   : > { %v1157_v4 = vpop.f32.mrf.mxu1 }
 0x2ad   : > { %v1158_v5 = vadd.f32 %v2468_v2, %v1157_v4 }
 0x2af   : > { %v1181_v11 = vmax.f32 %v1158_v5, 0.0 }
 0x2b1   : > { %v1191_v13 = vpack.c.bf16 %v1181_v11, %v1180_v7 }
 0x2b3   : > { %1297 = vmatmul.bf16.gmra.mxu2 %v1191_v13 }
 0x2be   : > { %v1160_v14 = vpop.f32.mrf.mxu1 }
 0x2bf   : > { %v1161_v16 = vadd.f32 %v2468_v2, %v1160_v14 }
 0x2c1   : > { %v1182_v22 = vmax.f32 %v1161_v16, 0.0 }
 0x2c5   : > { %v1273_v17 = vpop.f32.mrf.mxu2 }
 0x2c6   : > { %v1162_v18 = vpop.f32.mrf.mxu1  ;;  %v1274_v9 = vadd.f32 %v2527_v21, %v1273_v17 }
 0x2c7   : > { %v1163_v61 = vadd.f32 %v2468_v2, %v1162_v18 }
 0x2c8   : > { %v1313_v48 = vmax.f32 %v1274_v9, 0.0 }
 0x2c9   : > { %v1183_v1 = vmax.f32 %v1163_v61, 0.0 }
 0x2cb   : > { %v1192_v46 = vpack.c.bf16 %v1183_v1, %v1182_v22 }
 0x2cd   : > { %v1275_v25 = vpop.f32.mrf.mxu2  ;;  %1302 = vmatmul.bf16.gmra.mxu2 %v1192_v46 }
 0x2ce   : > { %v1276_v15 = vadd.f32 %v2527_v21, %v1275_v25  ;;  %v1454_v25 = vlaneseq }
 0x2d0   : > { %v1314_v27 = vmax.f32 %v1276_v15, 0.0  ;;  %v1165_v28 = vpop.f32.mrf.mxu1 }
 0x2d1   : > { %v1166_v31 = vadd.f32 %v2468_v2, %v1165_v28 }
 0x2d2   : > { %v1329_v29 = vpack.c.bf16 %v1314_v27, %v1313_v48  ;;  %v2544_v48 = vand.u32 127, %v1454_v25  ;;  %v2549_v27 = vld [vmem:[%s2683_s9] ss:$0 sm:$0xff] }
 0x2d3   : > { %v1184_v0 = vmax.f32 %v1166_v31, 0.0 }
 0x2d4   : > { %1413 = vmatmul.bf16.vlgmr.msra.gmra.mxu3 %v1329_v29  ;;  %vm1456_vm0 = vcmp.lt.s32.totalorder %v2544_v48, 64 }
 0x2d5   : > { %v1278_v30 = vpop.f32.mrf.mxu2 }
 0x2d6   : > { %v1279_v33 = vadd.f32 %v2527_v21, %v1278_v30 }
 0x2d8   : > { %v1167_v32 = vpop.f32.mrf.mxu1  ;;  %v1315_v39 = vmax.f32 %v1279_v33, 0.0 }
 0x2d9   : > { %v1168_v50 = vadd.f32 %v2468_v2, %v1167_v32 }
 0x2db   : > { %v1185_v53 = vmax.f32 %v1168_v50, 0.0 }
 0x2dd   : > { %v1280_v36 = vpop.f32.mrf.mxu2  ;;  %v1193_v57 = vpack.c.bf16 %v1185_v53, %v1184_v0 }
 0x2de   : > { %v1281_v37 = vadd.f32 %v2527_v21, %v1280_v36 }
 0x2df   : > { %1307 = vmatmul.bf16.gmra.mxu2 %v1193_v57 }
 0x2e0   : > { %v1316_v60 = vmax.f32 %v1281_v37, 0.0 }
 0x2e2   : > { %v1330_v41 = vpack.c.bf16 %v1316_v60, %v1315_v39 }
 0x2e4   : > { %1418 = vmatmul.bf16.gmra.mxu3 %v1330_v41 }
 0x2e8   : > { %v1283_v43 = vpop.f32.mrf.mxu2 }
 0x2e9   : > { %v1284_v44 = vadd.f32 %v2527_v21, %v1283_v43 }
 0x2eb   : > { %v1317_v2 = vmax.f32 %v1284_v44, 0.0 }
 0x2f0   : > { %v1285_v47 = vpop.f32.mrf.mxu2 }
 0x2f1   : > { %v1286_v49 = vadd.f32 %v2527_v21, %v1285_v47 }
 0x2f3   : > { %v1318_v42 = vmax.f32 %v1286_v49, 0.0 }
 0x2f5   : > { %v1331_v51 = vpack.c.bf16 %v1318_v42, %v1317_v2 }
 0x2f7   : > { %1423 = vmatmul.bf16.gmra.mxu3 %v1331_v51 }
 0x302   : > { %v1288_v54 = vpop.f32.mrf.mxu2 }
 0x303   : > { %v1289_v56 = vadd.f32 %v2527_v21, %v1288_v54 }
 0x305   : > { %v1319_v3 = vmax.f32 %v1289_v56, 0.0 }
 0x30a   : > { %v1290_v45 = vpop.f32.mrf.mxu2 }
 0x30b   : > { %v1291_v63 = vadd.f32 %v2527_v21, %v1290_v45 }
 0x30d   : > { %v1320_v55 = vmax.f32 %v1291_v63, 0.0 }
 0x30f   : > { %v1332_v4 = vpack.c.bf16 %v1320_v55, %v1319_v3 }
 0x311   : > { %1428 = vmatmul.bf16.gmra.mxu3 %v1332_v4 }
 0x314   : > { %v1293_v5 = vpop.f32.mrf.mxu2 }
 0x315   : > { %v1294_v7 = vadd.f32 %v2527_v21, %v1293_v5 }
 0x317   : > { %v1321_v13 = vmax.f32 %v1294_v7, 0.0 }
 0x31c   : > { %v1295_v11 = vpop.f32.mrf.mxu2 }
 0x31d   : > { %v1296_v12 = vadd.f32 %v2527_v21, %v1295_v11 }
 0x31f   : > { %v1322_v14 = vmax.f32 %v1296_v12, 0.0 }
 0x321   : > { %v1333_v16 = vpack.c.bf16 %v1322_v14, %v1321_v13 }
 0x323   : > { %1433 = vmatmul.bf16.gmra.mxu3 %v1333_v16 }
 0x336   : > { %v1298_v17 = vpop.f32.mrf.mxu2 }
 0x337   : > { %v1299_v18 = vadd.f32 %v2527_v21, %v1298_v17 }
 0x339   : > { %v1323_v1 = vmax.f32 %v1299_v18, 0.0 }
 0x33e   : > { %v1300_v61 = vpop.f32.mrf.mxu2 }
 0x33f   : > { %v1301_v22 = vadd.f32 %v2527_v21, %v1300_v61 }
 0x341   : > { %v1324_v46 = vmax.f32 %v1301_v22, 0.0 }
 0x343   : > { %v1334_v9 = vpack.c.bf16 %v1324_v46, %v1323_v1 }
 0x345   : > { %1438 = vmatmul.bf16.gmra.mxu3 %v1334_v9 }
 0x350   : > { %v1303_v15 = vpop.f32.mrf.mxu2 }
 0x351   : > { %v1304_v28 = vadd.f32 %v2527_v21, %v1303_v15 }
 0x353   : > { %v1325_v0 = vmax.f32 %v1304_v28, 0.0 }
 0x357   : > { %v1414_v29 = vpop.f32.mrf.mxu3 }
 0x358   : > { %v1415_v30 = vadd.f32 %v2549_v27, %v1414_v29  ;;  %v1305_v31 = vpop.f32.mrf.mxu2 }
 0x359   : > { %v1306_v32 = vadd.f32 %v2527_v21, %v1305_v31 }
 0x35a   : > { %v1457_v50 = vsel %vm1456_vm0, %v2369_v19, %v1415_v30 }
 0x35b   : > { %1473 = vst [vmem:[%s2560_s27] sm:$0xff] %v1457_v50  ;;  %v1326_v53 = vmax.f32 %v1306_v32, 0.0 }
 0x35d   : > { %v1335_v33 = vpack.c.bf16 %v1326_v53, %v1325_v0 }
 0x35f   : > { %v1416_v36 = vpop.f32.mrf.mxu3  ;;  %1443 = vmatmul.bf16.gmra.mxu3 %v1335_v33 }
 0x360   : > { %v1417_v57 = vadd.f32 %v2549_v27, %v1416_v36 }
 0x362   : > { %v1458_v37 = vsel %vm1456_vm0, %v2373_v20, %v1417_v57  ;;  %v1308_v39 = vpop.f32.mrf.mxu2 }
 0x363   : > { %1474 = vst [vmem:[%s2560_s27 + $0x8] sm:$0xff] %v1458_v37  ;;  %v1309_v41 = vadd.f32 %v2527_v21, %v1308_v39 }
 0x365   : > { %v1327_v49 = vmax.f32 %v1309_v41, 0.0 }
 0x367   : > { %v1419_v19 = vpop.f32.mrf.mxu3 }
 0x368   : > { %v1420_v60 = vadd.f32 %v2549_v27, %v1419_v19 }
 0x36a   : > { %v1459_v43 = vsel %vm1456_vm0, %v2382_v24, %v1420_v60  ;;  %v1310_v44 = vpop.f32.mrf.mxu2 }
 0x36b   : > { %1475 = vst [vmem:[%s2560_s27 + $0x10] sm:$0xff] %v1459_v43  ;;  %v1311_v47 = vadd.f32 %v2527_v21, %v1310_v44 }
 0x36d   : > { %v1328_v20 = vmax.f32 %v1311_v47, 0.0 }
 0x36f   : > { %v1421_v2 = vpop.f32.mrf.mxu3  ;;  %v1336_v42 = vpack.c.bf16 %v1328_v20, %v1327_v49 }
 0x370   : > { %v1422_v51 = vadd.f32 %v2549_v27, %v1421_v2 }
 0x371   : > { %1448 = vmatmul.bf16.gmra.mxu3 %v1336_v42 }
 0x372   : > { %v1460_v54 = vsel %vm1456_vm0, %v2387_v62, %v1422_v51 }
 0x373   : > { %1476 = vst [vmem:[%s2560_s27 + $0x18] sm:$0xff] %v1460_v54 }
 0x37a   : > { %v1424_v24 = vpop.f32.mrf.mxu3 }
 0x37b   : > { %v1425_v56 = vadd.f32 %v2549_v27, %v1424_v24 }
 0x37d   : > { %v1461_v21 = vsel %vm1456_vm0, %v2398_v23, %v1425_v56 }
 0x37e   : > { %1477 = vst [vmem:[%s2560_s27 + $0x20] sm:$0xff] %v1461_v21 }
 0x382   : > { %v1426_v45 = vpop.f32.mrf.mxu3 }
 0x383   : > { %v1427_v63 = vadd.f32 %v2549_v27, %v1426_v45 }
 0x385   : > { %v1462_v3 = vsel %vm1456_vm0, %v2402_v26, %v1427_v63 }
 0x386   : > { %1478 = vst [vmem:[%s2560_s27 + $0x28] sm:$0xff] %v1462_v3 }
 0x394   : > { %v1429_v62 = vpop.f32.mrf.mxu3 }
 0x395   : > { %v1430_v55 = vadd.f32 %v2549_v27, %v1429_v62 }
 0x397   : > { %v1463_v4 = vsel %vm1456_vm0, %v2417_v34, %v1430_v55 }
 0x398   : > { %1479 = vst [vmem:[%s2560_s27 + $0x30] sm:$0xff] %v1463_v4 }
 0x39c   : > { %v1431_v23 = vpop.f32.mrf.mxu3 }
 0x39d   : > { %v1432_v5 = vadd.f32 %v2549_v27, %v1431_v23 }
 0x39f   : > { %v1464_v7 = vsel %vm1456_vm0, %v2421_v35, %v1432_v5 }
 0x3a0   : > { %1480 = vst [vmem:[%s2560_s27 + $0x38] sm:$0xff] %v1464_v7 }
 0x3a6   : > { %v1434_v26 = vpop.f32.mrf.mxu3 }
 0x3a7   : > { %v1435_v11 = vadd.f32 %v2549_v27, %v1434_v26 }
 0x3a9   : > { %v1465_v12 = vsel %vm1456_vm0, %v2427_v38, %v1435_v11 }
 0x3aa   : > { %1481 = vst [vmem:[%s2560_s27 + $0x40] sm:$0xff] %v1465_v12 }
 0x3ae   : > { %v1436_v34 = vpop.f32.mrf.mxu3 }
 0x3af   : > { %v1437_v13 = vadd.f32 %v2549_v27, %v1436_v34 }
 0x3b1   : > { %v1466_v14 = vsel %vm1456_vm0, %v2425_v40, %v1437_v13 }
 0x3b2   : > { %1482 = vst [vmem:[%s2560_s27 + $0x48] sm:$0xff] %v1466_v14 }
 0x3c8   : > { %v1439_v35 = vpop.f32.mrf.mxu3 }
 0x3c9   : > { %v1440_v16 = vadd.f32 %v2549_v27, %v1439_v35 }
 0x3cb   : > { %v1467_v17 = vsel %vm1456_vm0, %v2457_v58, %v1440_v16 }
 0x3cc   : > { %1483 = vst [vmem:[%s2560_s27 + $0x50] sm:$0xff] %v1467_v17 }
 0x3d0   : > { %v1441_v38 = vpop.f32.mrf.mxu3 }
 0x3d1   : > { %v1442_v18 = vadd.f32 %v2549_v27, %v1441_v38 }
 0x3d3   : > { %v1468_v61 = vsel %vm1456_vm0, %v2461_v59, %v1442_v18 }
 0x3d4   : > { %1484 = vst [vmem:[%s2560_s27 + $0x58] sm:$0xff] %v1468_v61 }
 0x3e2   : > { %v1444_v40 = vpop.f32.mrf.mxu3 }
 0x3e3   : > { %v1445_v22 = vadd.f32 %v2549_v27, %v1444_v40 }
 0x3e5   : > { %v1469_v1 = vsel %vm1456_vm0, %v2474_v8, %v1445_v22 }
 0x3e6   : > { %1485 = vst [vmem:[%s2560_s27 + $0x60] sm:$0xff] %v1469_v1 }
 0x3ea   : > { %v1446_v58 = vpop.f32.mrf.mxu3 }
 0x3eb   : > { %v1447_v46 = vadd.f32 %v2549_v27, %v1446_v58 }
 0x3ed   : > { %v1470_v9 = vsel %vm1456_vm0, %v2476_v10, %v1447_v46 }
 0x3ee   : > { %1486 = vst [vmem:[%s2560_s27 + $0x68] sm:$0xff] %v1470_v9 }
 0x3f4   : > { %v1449_v59 = vpop.f32.mrf.mxu3 }
 0x3f5   : > { %v1450_v25 = vadd.f32 %v2549_v27, %v1449_v59 }
 0x3f7   : > { %v1471_v15 = vsel %vm1456_vm0, %v2486_v6, %v1450_v25 }
 0x3f8   : > { %1487 = vst [vmem:[%s2560_s27 + $0x70] sm:$0xff] %v1471_v15 }
 0x3fc   : > { %v1451_v8 = vpop.f32.mrf.mxu3 }
 0x3fd   : > { %v1452_v10 = vadd.f32 %v2549_v27, %v1451_v8 }
 0x3ff   : > { %v1472_v28 = vsel %vm1456_vm0, %v2482_v52, %v1452_v10 }
 0x400   : > { %1488 = vst [vmem:[%s2560_s27 + $0x78] sm:$0xff] %v1472_v28 }
 0x401   : > { %1881 = shalt.err (!%p1878_p3)
}
 0x402   : > { %s1921_s29 = smov 128   ;;  %s1922_s27 = smov 8  }
 0x403   : > { %1771 = dma.vmem_to_hbm [thread:$0]  (%p2016_p5), %s1503_s18, 2048, %s1505_s20, %s1490_s17, %s1921_s29, %s1921_s29, %s1922_s27  }
 0x404 PF: > { %p1777_p4 = scmp.ge.s32.totalorder %s1916_s16, 2  ;;  %s1519_s26 = sand.u32 1, %s1904_s13  }
 0x405   : > { %s1520_s28 = scalar_lea.sflag [#allocation3], %s1519_s26 }
 0x406   : > { %p1774_p7 = pnand %p1777_p4, %p2020_p6 }
 0x408   : > { %p1775_p8 = pneg %p1774_p7 }
 0x40a   : > { %1899 = dma.done.wait (%p1775_p8), %s1520_s28, 2048  }
 0x40b   : > { %1901 = vsyncadd (%p1775_p8), %s1520_s28, 4294965248  ;;  %p20_p9 = scmp.ge.s32.totalorder %s2003_s19, 4   ;;  %s2687_s13 = smov %s1908_s14 }
 0x40c   : > { %s2688_s14 = smov %s1912_s15  ;;  %s2689_s15 = smov %s2014_s22 }
 0x40d   : > { %s2690_s16 = smov %s2003_s19  ;;  %22 = sbr.rel (!%p20_p9) target bundleno = 3 (0x3), region = 100 }
 0x412   :  { %1526 = vsyncpa [#allocation3], 1 }
 0x413   :  { %1528 = vsyncpa [#allocation3 + $0x1], 1 }

</bundles_post_ra>
